<compile_context>
chip_gen: v7x
topology: tpu7x:2x2x1
jax: 0.10.0
libtpu: 0.0.40
codegen_flags: <defaults>
</compile_context>

<pallas_src>
import jax
import jax.numpy as jnp
from jax.experimental import pallas as pl
from jax.experimental.pallas import tpu as pltpu

N_EMBD = 128          # fixed by the module's globals
N_HEAD = 4
HEAD_SIZE = N_EMBD // N_HEAD
FF_HIDDEN = 4 * N_EMBD
EPS = 1e-5            # nn.LayerNorm default


def _layernorm(h, g, b):
    mu = jnp.mean(h, axis=-1, keepdims=True)
    var = jnp.mean((h - mu) ** 2, axis=-1, keepdims=True)
    return (h - mu) * jax.lax.rsqrt(var + EPS) * g + b


def block_kernel(x_ref,
                 ln1g_ref, ln1b_ref,
                 wqkv_ref, wp_ref, bp_ref,
                 ln2g_ref, ln2b_ref,
                 w1_ref, b1_ref, w2_ref, b2_ref,
                 out_ref):
    Bb, T, C = x_ref.shape
    x = x_ref[...].reshape(Bb * T, C)                    # (Bb*T, C) f32

    # ---- self-attention branch -------------------------------------------
    h1 = _layernorm(x, ln1g_ref[...], ln1b_ref[...]).astype(jnp.bfloat16)

    # Fused QKV projection: one MXU pass with N = 3C.  The logit scale is
    # already folded into the q-columns of wqkv (host-side).
    qkv = jnp.dot(h1, wqkv_ref[...],
                  preferred_element_type=jnp.float32)    # (Bb*T, 3C) f32
    qkv = qkv.astype(jnp.bfloat16)                       # single cast for q,k,v
    q = qkv[:, :C].reshape(Bb, T, C)
    k = qkv[:, C:2 * C].reshape(Bb, T, C)
    v = qkv[:, 2 * C:].reshape(Bb, T, C)

    # Additive causal mask built in-kernel (0 visible / -1e30 masked).
    row = jax.lax.broadcasted_iota(jnp.int32, (T, T), 0)
    col = jax.lax.broadcasted_iota(jnp.int32, (T, T), 1)
    neg = jnp.where(row >= col, 0.0, -1e30)              # (T, T) f32

    # Per-head attention (K=32 score/PV matmuls are inherent to MHA); head
    # outputs are lane-packed into one (Bb*T, C) buffer so the output
    # projection is a single K=128 matmul.
    heads = []
    for h in range(N_HEAD):                              # static, N_HEAD = 4
        sl = slice(h * HEAD_SIZE, (h + 1) * HEAD_SIZE)
        s = jnp.einsum('btd,bsd->bts', q[:, :, sl], k[:, :, sl],
                       preferred_element_type=jnp.float32)   # (Bb, T, T) f32
        s = s + neg                                       # additive causal mask
        s = s - jnp.max(s, axis=-1, keepdims=True)
        p = jnp.exp(s)
        p = p * pl.reciprocal(jnp.sum(p, axis=-1, keepdims=True), approx=True)
        heads.append(jnp.einsum('bts,bsd->btd', p.astype(jnp.bfloat16),
                                v[:, :, sl],
                                preferred_element_type=jnp.float32))
    o = jnp.concatenate(heads, axis=-1).reshape(Bb * T, C).astype(jnp.bfloat16)
    sa = jnp.dot(o, wp_ref[...], preferred_element_type=jnp.float32) + bp_ref[...]
    # TODO(synk): dropout omitted (inference semantics — identity).

    x1 = x + sa                                           # residual 1 (f32)

    # ---- feed-forward branch ---------------------------------------------
    h2 = _layernorm(x1, ln2g_ref[...], ln2b_ref[...]).astype(jnp.bfloat16)
    f = jnp.dot(h2, w1_ref[...], preferred_element_type=jnp.float32) + b1_ref[...]
    f = jnp.maximum(f, 0.0)
    f = jnp.dot(f.astype(jnp.bfloat16), w2_ref[...],
                preferred_element_type=jnp.float32) + b2_ref[...]

    out_ref[...] = (x1 + f).reshape(Bb, T, C)


def _pick_block_batch(B, T, max_rows=2048, min_steps=2):
    """Largest divisor Bb of B such that Bb*T rows fits the VMEM budget,
    while keeping the grid at >= min_steps steps when B > 1 (v7x: 2 TCs)."""
    cap = max(1, B // min_steps)
    bb = 1
    for cand in range(1, cap + 1):
        if B % cand == 0 and cand * T <= max_rows:
            bb = cand
    return bb


def prepare_weights(params):
    """Host-side weight prep, done once (not on the per-call path):
    fused QKV with the logit scale folded into q-columns, bf16 matmul weights."""
    scale = float(N_EMBD) ** -0.5     # reference scales by n_embd**-0.5 — see note
    wqkv = jnp.concatenate(
        [params["wq"] * scale, params["wk"], params["wv"]],
        axis=1).astype(jnp.bfloat16)                                # (C, 3C)
    return {
        "ln1g": params["ln1g"], "ln1b": params["ln1b"],
        "wqkv": wqkv,
        "wp": params["wp"].astype(jnp.bfloat16), "bp": params["bp"],
        "ln2g": params["ln2g"], "ln2b": params["ln2b"],
        "w1": params["w1"].astype(jnp.bfloat16), "b1": params["b1"],
        "w2": params["w2"].astype(jnp.bfloat16), "b2": params["b2"],
    }


def run_block(x, w):
    B, T, C = x.shape
    assert C == N_EMBD

    Bb = _pick_block_batch(B, T)
    grid = (B // Bb,)

    ordered = [
        w["ln1g"], w["ln1b"],
        w["wqkv"], w["wp"], w["bp"],
        w["ln2g"], w["ln2b"],
        w["w1"], w["b1"], w["w2"], w["b2"],
    ]

    in_specs = [pl.BlockSpec((Bb, T, C), lambda i: (i, 0, 0))]       # x
    for arr in ordered:                                              # resident weights
        in_specs.append(pl.BlockSpec(arr.shape, lambda i: (0, 0)))

    return pl.pallas_call(
        block_kernel,
        out_shape=jax.ShapeDtypeStruct((B, T, C), jnp.float32),
        grid_spec=pltpu.PrefetchScalarGridSpec(
            num_scalar_prefetch=0,
            grid=grid,
            in_specs=in_specs,
            out_specs=pl.BlockSpec((Bb, T, C), lambda i: (i, 0, 0)),
        ),
        compiler_params=pltpu.CompilerParams(
            dimension_semantics=("parallel",),
            vmem_limit_bytes=64 * 1024 * 1024),
    )(x, *ordered)


def init_params(key):
    ks = jax.random.split(key, 10)
    n = lambda k, shape, scale=0.02: (scale * jax.random.normal(k, shape)).astype(jnp.float32)
    return {
        # LayerNorm params (PyTorch default init: gamma=1, beta=0)
        "ln1g": jnp.ones((1, N_EMBD), jnp.float32),
        "ln1b": jnp.zeros((1, N_EMBD), jnp.float32),
        "ln2g": jnp.ones((1, N_EMBD), jnp.float32),
        "ln2b": jnp.zeros((1, N_EMBD), jnp.float32),
        # per-head key/query/value weights concatenated along output dim
        "wq": n(ks[0], (N_EMBD, N_EMBD)),
        "wk": n(ks[1], (N_EMBD, N_EMBD)),
        "wv": n(ks[2], (N_EMBD, N_EMBD)),
        # output projection
        "wp": n(ks[3], (N_EMBD, N_EMBD)),
        "bp": n(ks[4], (1, N_EMBD)),
        # feed-forward
        "w1": n(ks[5], (N_EMBD, FF_HIDDEN)),
        "b1": n(ks[6], (1, FF_HIDDEN)),
        "w2": n(ks[7], (FF_HIDDEN, N_EMBD)),
        "b2": n(ks[8], (1, N_EMBD)),
    }


def reference(x, p):
    """Pure-JAX f32 reference matching the PyTorch module semantics."""
    def ln(h, g, b):
        mu = h.mean(-1, keepdims=True)
        var = ((h - mu) ** 2).mean(-1, keepdims=True)
        return (h - mu) / jnp.sqrt(var + EPS) * g + b

    B, T, C = x.shape
    h1 = ln(x, p["ln1g"], p["ln1b"])
    q, k, v = h1 @ p["wq"], h1 @ p["wk"], h1 @ p["wv"]
    mask = jnp.tril(jnp.ones((T, T), bool))
    outs = []
    for h in range(N_HEAD):
        sl = slice(h * HEAD_SIZE, (h + 1) * HEAD_SIZE)
        s = q[..., sl] @ jnp.swapaxes(k[..., sl], -1, -2) * (C ** -0.5)
        s = jnp.where(mask, s, -jnp.inf)
        outs.append(jax.nn.softmax(s, axis=-1) @ v[..., sl])
    sa = jnp.concatenate(outs, -1) @ p["wp"] + p["bp"][0]
    x1 = x + sa
    h2 = ln(x1, p["ln2g"], p["ln2b"])
    f = jnp.maximum(h2 @ p["w1"] + p["b1"][0], 0.0) @ p["w2"] + p["b2"][0]
    return x1 + f


if __name__ == "__main__":
    key = jax.random.PRNGKey(0)
    k_x, k_p = jax.random.split(key)

    B, T = 2, 8                      # small seq, T <= block_size (256)
    x = jax.random.normal(k_x, (B, T, N_EMBD), dtype=jnp.float32)
    params = init_params(k_p)

    weights = prepare_weights(params)          # hoisted one-time weight prep
    out = run_block(x, weights)
    out = jax.block_until_ready(out)

    ref = reference(x, params)
    assert out.shape == (B, T, N_EMBD)
    # bf16 matmul operands + approx reciprocal => compare with loose tolerance.
    assert jnp.allclose(out, ref, atol=2e-2, rtol=2e-2), "mismatch vs JAX reference"

    print("KERNEL_OK")
</pallas_src>

<mosaic_0001>
module attributes {stable_mosaic.version = 11 : i64} {
  func.func @block_kernel(%arg0: i32, %arg1: memref<1x8x128xf32, #tpu.memory_space<vmem>>, %arg2: memref<1x128xf32, #tpu.memory_space<vmem>>, %arg3: memref<1x128xf32, #tpu.memory_space<vmem>>, %arg4: memref<128x384xbf16, #tpu.memory_space<vmem>>, %arg5: memref<128x128xbf16, #tpu.memory_space<vmem>>, %arg6: memref<1x128xf32, #tpu.memory_space<vmem>>, %arg7: memref<1x128xf32, #tpu.memory_space<vmem>>, %arg8: memref<1x128xf32, #tpu.memory_space<vmem>>, %arg9: memref<128x512xbf16, #tpu.memory_space<vmem>>, %arg10: memref<1x512xf32, #tpu.memory_space<vmem>>, %arg11: memref<512x128xbf16, #tpu.memory_space<vmem>>, %arg12: memref<1x128xf32, #tpu.memory_space<vmem>>, %arg13: memref<1x8x128xf32, #tpu.memory_space<vmem>>) attributes {dimension_semantics = [#tpu.dimension_semantics<parallel>], iteration_bounds = array<i64: 2>, scalar_prefetch = 0 : i64, scratch_operands = 0 : i64, tpu.core_type = #tpu.core_type<tc>, window_params = [{transform_indices = @transform_0, window_bounds = array<i64: 1, 8, 128>}, {pipeline_mode = #tpu.pipeline_mode<synchronous>, transform_indices = @transform_1, window_bounds = array<i64: 1, 128>}, {pipeline_mode = #tpu.pipeline_mode<synchronous>, transform_indices = @transform_2, window_bounds = array<i64: 1, 128>}, {pipeline_mode = #tpu.pipeline_mode<synchronous>, transform_indices = @transform_3, window_bounds = array<i64: 128, 384>}, {pipeline_mode = #tpu.pipeline_mode<synchronous>, transform_indices = @transform_4, window_bounds = array<i64: 128, 128>}, {pipeline_mode = #tpu.pipeline_mode<synchronous>, transform_indices = @transform_5, window_bounds = array<i64: 1, 128>}, {pipeline_mode = #tpu.pipeline_mode<synchronous>, transform_indices = @transform_6, window_bounds = array<i64: 1, 128>}, {pipeline_mode = #tpu.pipeline_mode<synchronous>, transform_indices = @transform_7, window_bounds = array<i64: 1, 128>}, {pipeline_mode = #tpu.pipeline_mode<synchronous>, transform_indices = @transform_8, window_bounds = array<i64: 128, 512>}, {pipeline_mode = #tpu.pipeline_mode<synchronous>, transform_indices = @transform_9, window_bounds = array<i64: 1, 512>}, {pipeline_mode = #tpu.pipeline_mode<synchronous>, transform_indices = @transform_10, window_bounds = array<i64: 512, 128>}, {pipeline_mode = #tpu.pipeline_mode<synchronous>, transform_indices = @transform_11, window_bounds = array<i64: 1, 128>}, {transform_indices = @transform_12, window_bounds = array<i64: 1, 8, 128>}]} {
    %c0 = arith.constant 0 : index
    %c0_0 = arith.constant 0 : index
    %c0_1 = arith.constant 0 : index
    %0 = vector.load %arg1[%c0, %c0_0, %c0_1] : memref<1x8x128xf32, #tpu.memory_space<vmem>>, vector<1x8x128xf32>
    %1 = vector.shape_cast %0 : vector<1x8x128xf32> to vector<8x128xf32>
    %c0_2 = arith.constant 0 : index
    %c0_3 = arith.constant 0 : index
    %2 = vector.load %arg2[%c0_2, %c0_3] : memref<1x128xf32, #tpu.memory_space<vmem>>, vector<1x128xf32>
    %c0_4 = arith.constant 0 : index
    %c0_5 = arith.constant 0 : index
    %3 = vector.load %arg3[%c0_4, %c0_5] : memref<1x128xf32, #tpu.memory_space<vmem>>, vector<1x128xf32>
    %cst = arith.constant dense<0.000000e+00> : vector<8xf32>
    %4 = vector.multi_reduction <add>, %1, %cst [1] : vector<8x128xf32> to vector<8xf32>
    %5 = vector.shape_cast %4 : vector<8xf32> to vector<8x1xf32>
    %cst_6 = arith.constant 1.280000e+02 : f32
    %6 = vector.broadcast %cst_6 : f32 to vector<8x1xf32>
    %7 = arith.divf %5, %6 : vector<8x1xf32>
    %8 = vector.broadcast %7 : vector<8x1xf32> to vector<8x128xf32>
    %9 = arith.subf %1, %8 : vector<8x128xf32>
    %10 = arith.mulf %9, %9 : vector<8x128xf32>
    %cst_7 = arith.constant dense<0.000000e+00> : vector<8xf32>
    %11 = vector.multi_reduction <add>, %10, %cst_7 [1] : vector<8x128xf32> to vector<8xf32>
    %12 = vector.shape_cast %11 : vector<8xf32> to vector<8x1xf32>
    %cst_8 = arith.constant 1.280000e+02 : f32
    %13 = vector.broadcast %cst_8 : f32 to vector<8x1xf32>
    %14 = arith.divf %12, %13 : vector<8x1xf32>
    %15 = vector.broadcast %7 : vector<8x1xf32> to vector<8x128xf32>
    %16 = arith.subf %1, %15 : vector<8x128xf32>
    %cst_9 = arith.constant 9.99999974E-6 : f32
    %17 = vector.broadcast %cst_9 : f32 to vector<8x1xf32>
    %18 = arith.addf %14, %17 : vector<8x1xf32>
    %19 = math.rsqrt %18 : vector<8x1xf32>
    %20 = vector.broadcast %19 : vector<8x1xf32> to vector<8x128xf32>
    %21 = arith.mulf %16, %20 : vector<8x128xf32>
    %22 = vector.broadcast %2 : vector<1x128xf32> to vector<8x128xf32>
    %23 = arith.mulf %21, %22 : vector<8x128xf32>
    %24 = vector.broadcast %3 : vector<1x128xf32> to vector<8x128xf32>
    %25 = arith.addf %23, %24 : vector<8x128xf32>
    %26 = arith.truncf %25 : vector<8x128xf32> to vector<8x128xbf16>
    %c0_10 = arith.constant 0 : index
    %c0_11 = arith.constant 0 : index
    %27 = vector.load %arg4[%c0_10, %c0_11] : memref<128x384xbf16, #tpu.memory_space<vmem>>, vector<128x384xbf16>
    %cst_12 = arith.constant dense<0.000000e+00> : vector<8x384xf32>
    %28 = tpu.matmul %26, %27, %cst_12 {dimension_numbers = #tpu.dot_dimension_numbers<[1], [0], [0], [1], [0, 0, 1, 1], [], []>} : vector<8x128xbf16>, vector<128x384xbf16>, vector<8x384xf32> -> vector<8x384xf32>
    %29 = arith.truncf %28 : vector<8x384xf32> to vector<8x384xbf16>
    %30 = vector.extract_strided_slice %29 {offsets = [0, 0], sizes = [8, 128], strides = [1, 1]} : vector<8x384xbf16> to vector<8x128xbf16>
    %31 = vector.shape_cast %30 : vector<8x128xbf16> to vector<1x8x128xbf16>
    %32 = vector.extract_strided_slice %29 {offsets = [0, 128], sizes = [8, 128], strides = [1, 1]} : vector<8x384xbf16> to vector<8x128xbf16>
    %33 = vector.shape_cast %32 : vector<8x128xbf16> to vector<1x8x128xbf16>
    %34 = vector.extract_strided_slice %29 {offsets = [0, 256], sizes = [8, 128], strides = [1, 1]} : vector<8x384xbf16> to vector<8x128xbf16>
    %35 = vector.shape_cast %34 : vector<8x128xbf16> to vector<1x8x128xbf16>
    %36 = tpu.iota {dimensions = array<i32: 0>} : vector<8x8xi32>
    %37 = tpu.iota {dimensions = array<i32: 1>} : vector<8x8xi32>
    %38 = arith.cmpi sge, %36, %37 : vector<8x8xi32>
    %cst_13 = arith.constant 0.000000e+00 : f32
    %cst_14 = arith.constant -1.000000e+30 : f32
    %39 = vector.broadcast %cst_13 : f32 to vector<8x8xf32>
    %40 = vector.broadcast %cst_14 : f32 to vector<8x8xf32>
    %41 = arith.select %38, %39, %40 : vector<8x8xi1>, vector<8x8xf32>
    %42 = vector.extract_strided_slice %31 {offsets = [0, 0, 0], sizes = [1, 8, 32], strides = [1, 1, 1]} : vector<1x8x128xbf16> to vector<1x8x32xbf16>
    %43 = vector.extract_strided_slice %33 {offsets = [0, 0, 0], sizes = [1, 8, 32], strides = [1, 1, 1]} : vector<1x8x128xbf16> to vector<1x8x32xbf16>
    "tpu.trace_start"() <{level = 10 : i32, message = "btd,bsd->bts"}> : () -> ()
    %cst_15 = arith.constant dense<0.000000e+00> : vector<1x8x8xf32>
    %44 = tpu.matmul %42, %43, %cst_15 {dimension_numbers = #tpu.dot_dimension_numbers<[2], [2], [1], [1], [0, 0, 0, 1, 1, 1], [0], [0]>} : vector<1x8x32xbf16>, vector<1x8x32xbf16>, vector<1x8x8xf32> -> vector<1x8x8xf32>
    "tpu.trace_stop"() : () -> ()
    %45 = vector.shape_cast %41 : vector<8x8xf32> to vector<1x8x8xf32>
    %46 = arith.addf %44, %45 : vector<1x8x8xf32>
    %cst_16 = arith.constant dense<0xFF800000> : vector<1x8xf32>
    %47 = vector.multi_reduction <maximumf>, %46, %cst_16 [2] : vector<1x8x8xf32> to vector<1x8xf32>
    %48 = vector.shape_cast %47 : vector<1x8xf32> to vector<1x8x1xf32>
    %49 = vector.broadcast %48 : vector<1x8x1xf32> to vector<1x8x8xf32>
    %50 = arith.subf %46, %49 : vector<1x8x8xf32>
    %51 = math.exp %50 : vector<1x8x8xf32>
    %cst_17 = arith.constant dense<0.000000e+00> : vector<1x8xf32>
    %52 = vector.multi_reduction <add>, %51, %cst_17 [2] : vector<1x8x8xf32> to vector<1x8xf32>
    %53 = vector.shape_cast %52 : vector<1x8xf32> to vector<1x8x1xf32>
    %54 = tpu.reciprocal %53 {approx = true} : vector<1x8x1xf32> -> vector<1x8x1xf32>
    %55 = vector.broadcast %54 : vector<1x8x1xf32> to vector<1x8x8xf32>
    %56 = arith.mulf %51, %55 : vector<1x8x8xf32>
    %57 = arith.truncf %56 : vector<1x8x8xf32> to vector<1x8x8xbf16>
    %58 = vector.extract_strided_slice %35 {offsets = [0, 0, 0], sizes = [1, 8, 32], strides = [1, 1, 1]} : vector<1x8x128xbf16> to vector<1x8x32xbf16>
    "tpu.trace_start"() <{level = 10 : i32, message = "bts,bsd->btd"}> : () -> ()
    %cst_18 = arith.constant dense<0.000000e+00> : vector<1x8x32xf32>
    %59 = tpu.matmul %57, %58, %cst_18 {dimension_numbers = #tpu.dot_dimension_numbers<[2], [1], [1], [2], [0, 0, 0, 1, 1, 2], [0], [0]>} : vector<1x8x8xbf16>, vector<1x8x32xbf16>, vector<1x8x32xf32> -> vector<1x8x32xf32>
    "tpu.trace_stop"() : () -> ()
    %60 = vector.extract_strided_slice %31 {offsets = [0, 0, 32], sizes = [1, 8, 32], strides = [1, 1, 1]} : vector<1x8x128xbf16> to vector<1x8x32xbf16>
    %61 = vector.extract_strided_slice %33 {offsets = [0, 0, 32], sizes = [1, 8, 32], strides = [1, 1, 1]} : vector<1x8x128xbf16> to vector<1x8x32xbf16>
    "tpu.trace_start"() <{level = 10 : i32, message = "btd,bsd->bts"}> : () -> ()
    %cst_19 = arith.constant dense<0.000000e+00> : vector<1x8x8xf32>
    %62 = tpu.matmul %60, %61, %cst_19 {dimension_numbers = #tpu.dot_dimension_numbers<[2], [2], [1], [1], [0, 0, 0, 1, 1, 1], [0], [0]>} : vector<1x8x32xbf16>, vector<1x8x32xbf16>, vector<1x8x8xf32> -> vector<1x8x8xf32>
    "tpu.trace_stop"() : () -> ()
    %63 = vector.shape_cast %41 : vector<8x8xf32> to vector<1x8x8xf32>
    %64 = arith.addf %62, %63 : vector<1x8x8xf32>
    %cst_20 = arith.constant dense<0xFF800000> : vector<1x8xf32>
    %65 = vector.multi_reduction <maximumf>, %64, %cst_20 [2] : vector<1x8x8xf32> to vector<1x8xf32>
    %66 = vector.shape_cast %65 : vector<1x8xf32> to vector<1x8x1xf32>
    %67 = vector.broadcast %66 : vector<1x8x1xf32> to vector<1x8x8xf32>
    %68 = arith.subf %64, %67 : vector<1x8x8xf32>
    %69 = math.exp %68 : vector<1x8x8xf32>
    %cst_21 = arith.constant dense<0.000000e+00> : vector<1x8xf32>
    %70 = vector.multi_reduction <add>, %69, %cst_21 [2] : vector<1x8x8xf32> to vector<1x8xf32>
    %71 = vector.shape_cast %70 : vector<1x8xf32> to vector<1x8x1xf32>
    %72 = tpu.reciprocal %71 {approx = true} : vector<1x8x1xf32> -> vector<1x8x1xf32>
    %73 = vector.broadcast %72 : vector<1x8x1xf32> to vector<1x8x8xf32>
    %74 = arith.mulf %69, %73 : vector<1x8x8xf32>
    %75 = arith.truncf %74 : vector<1x8x8xf32> to vector<1x8x8xbf16>
    %76 = vector.extract_strided_slice %35 {offsets = [0, 0, 32], sizes = [1, 8, 32], strides = [1, 1, 1]} : vector<1x8x128xbf16> to vector<1x8x32xbf16>
    "tpu.trace_start"() <{level = 10 : i32, message = "bts,bsd->btd"}> : () -> ()
    %cst_22 = arith.constant dense<0.000000e+00> : vector<1x8x32xf32>
    %77 = tpu.matmul %75, %76, %cst_22 {dimension_numbers = #tpu.dot_dimension_numbers<[2], [1], [1], [2], [0, 0, 0, 1, 1, 2], [0], [0]>} : vector<1x8x8xbf16>, vector<1x8x32xbf16>, vector<1x8x32xf32> -> vector<1x8x32xf32>
    "tpu.trace_stop"() : () -> ()
    %78 = vector.extract_strided_slice %31 {offsets = [0, 0, 64], sizes = [1, 8, 32], strides = [1, 1, 1]} : vector<1x8x128xbf16> to vector<1x8x32xbf16>
    %79 = vector.extract_strided_slice %33 {offsets = [0, 0, 64], sizes = [1, 8, 32], strides = [1, 1, 1]} : vector<1x8x128xbf16> to vector<1x8x32xbf16>
    "tpu.trace_start"() <{level = 10 : i32, message = "btd,bsd->bts"}> : () -> ()
    %cst_23 = arith.constant dense<0.000000e+00> : vector<1x8x8xf32>
    %80 = tpu.matmul %78, %79, %cst_23 {dimension_numbers = #tpu.dot_dimension_numbers<[2], [2], [1], [1], [0, 0, 0, 1, 1, 1], [0], [0]>} : vector<1x8x32xbf16>, vector<1x8x32xbf16>, vector<1x8x8xf32> -> vector<1x8x8xf32>
    "tpu.trace_stop"() : () -> ()
    %81 = vector.shape_cast %41 : vector<8x8xf32> to vector<1x8x8xf32>
    %82 = arith.addf %80, %81 : vector<1x8x8xf32>
    %cst_24 = arith.constant dense<0xFF800000> : vector<1x8xf32>
    %83 = vector.multi_reduction <maximumf>, %82, %cst_24 [2] : vector<1x8x8xf32> to vector<1x8xf32>
    %84 = vector.shape_cast %83 : vector<1x8xf32> to vector<1x8x1xf32>
    %85 = vector.broadcast %84 : vector<1x8x1xf32> to vector<1x8x8xf32>
    %86 = arith.subf %82, %85 : vector<1x8x8xf32>
    %87 = math.exp %86 : vector<1x8x8xf32>
    %cst_25 = arith.constant dense<0.000000e+00> : vector<1x8xf32>
    %88 = vector.multi_reduction <add>, %87, %cst_25 [2] : vector<1x8x8xf32> to vector<1x8xf32>
    %89 = vector.shape_cast %88 : vector<1x8xf32> to vector<1x8x1xf32>
    %90 = tpu.reciprocal %89 {approx = true} : vector<1x8x1xf32> -> vector<1x8x1xf32>
    %91 = vector.broadcast %90 : vector<1x8x1xf32> to vector<1x8x8xf32>
    %92 = arith.mulf %87, %91 : vector<1x8x8xf32>
    %93 = arith.truncf %92 : vector<1x8x8xf32> to vector<1x8x8xbf16>
    %94 = vector.extract_strided_slice %35 {offsets = [0, 0, 64], sizes = [1, 8, 32], strides = [1, 1, 1]} : vector<1x8x128xbf16> to vector<1x8x32xbf16>
    "tpu.trace_start"() <{level = 10 : i32, message = "bts,bsd->btd"}> : () -> ()
    %cst_26 = arith.constant dense<0.000000e+00> : vector<1x8x32xf32>
    %95 = tpu.matmul %93, %94, %cst_26 {dimension_numbers = #tpu.dot_dimension_numbers<[2], [1], [1], [2], [0, 0, 0, 1, 1, 2], [0], [0]>} : vector<1x8x8xbf16>, vector<1x8x32xbf16>, vector<1x8x32xf32> -> vector<1x8x32xf32>
    "tpu.trace_stop"() : () -> ()
    %96 = vector.extract_strided_slice %31 {offsets = [0, 0, 96], sizes = [1, 8, 32], strides = [1, 1, 1]} : vector<1x8x128xbf16> to vector<1x8x32xbf16>
    %97 = vector.extract_strided_slice %33 {offsets = [0, 0, 96], sizes = [1, 8, 32], strides = [1, 1, 1]} : vector<1x8x128xbf16> to vector<1x8x32xbf16>
    "tpu.trace_start"() <{level = 10 : i32, message = "btd,bsd->bts"}> : () -> ()
    %cst_27 = arith.constant dense<0.000000e+00> : vector<1x8x8xf32>
    %98 = tpu.matmul %96, %97, %cst_27 {dimension_numbers = #tpu.dot_dimension_numbers<[2], [2], [1], [1], [0, 0, 0, 1, 1, 1], [0], [0]>} : vector<1x8x32xbf16>, vector<1x8x32xbf16>, vector<1x8x8xf32> -> vector<1x8x8xf32>
    "tpu.trace_stop"() : () -> ()
    %99 = vector.shape_cast %41 : vector<8x8xf32> to vector<1x8x8xf32>
    %100 = arith.addf %98, %99 : vector<1x8x8xf32>
    %cst_28 = arith.constant dense<0xFF800000> : vector<1x8xf32>
    %101 = vector.multi_reduction <maximumf>, %100, %cst_28 [2] : vector<1x8x8xf32> to vector<1x8xf32>
    %102 = vector.shape_cast %101 : vector<1x8xf32> to vector<1x8x1xf32>
    %103 = vector.broadcast %102 : vector<1x8x1xf32> to vector<1x8x8xf32>
    %104 = arith.subf %100, %103 : vector<1x8x8xf32>
    %105 = math.exp %104 : vector<1x8x8xf32>
    %cst_29 = arith.constant dense<0.000000e+00> : vector<1x8xf32>
    %106 = vector.multi_reduction <add>, %105, %cst_29 [2] : vector<1x8x8xf32> to vector<1x8xf32>
    %107 = vector.shape_cast %106 : vector<1x8xf32> to vector<1x8x1xf32>
    %108 = tpu.reciprocal %107 {approx = true} : vector<1x8x1xf32> -> vector<1x8x1xf32>
    %109 = vector.broadcast %108 : vector<1x8x1xf32> to vector<1x8x8xf32>
    %110 = arith.mulf %105, %109 : vector<1x8x8xf32>
    %111 = arith.truncf %110 : vector<1x8x8xf32> to vector<1x8x8xbf16>
    %112 = vector.extract_strided_slice %35 {offsets = [0, 0, 96], sizes = [1, 8, 32], strides = [1, 1, 1]} : vector<1x8x128xbf16> to vector<1x8x32xbf16>
    "tpu.trace_start"() <{level = 10 : i32, message = "bts,bsd->btd"}> : () -> ()
    %cst_30 = arith.constant dense<0.000000e+00> : vector<1x8x32xf32>
    %113 = tpu.matmul %111, %112, %cst_30 {dimension_numbers = #tpu.dot_dimension_numbers<[2], [1], [1], [2], [0, 0, 0, 1, 1, 2], [0], [0]>} : vector<1x8x8xbf16>, vector<1x8x32xbf16>, vector<1x8x32xf32> -> vector<1x8x32xf32>
    "tpu.trace_stop"() : () -> ()
    %114 = tpu.concatenate %59, %77, %95, %113 in 2 : vector<1x8x32xf32>, vector<1x8x32xf32>, vector<1x8x32xf32>, vector<1x8x32xf32> -> vector<1x8x128xf32>
    %115 = vector.shape_cast %114 : vector<1x8x128xf32> to vector<8x128xf32>
    %116 = arith.truncf %115 : vector<8x128xf32> to vector<8x128xbf16>
    %c0_31 = arith.constant 0 : index
    %c0_32 = arith.constant 0 : index
    %117 = vector.load %arg5[%c0_31, %c0_32] : memref<128x128xbf16, #tpu.memory_space<vmem>>, vector<128x128xbf16>
    %cst_33 = arith.constant dense<0.000000e+00> : vector<8x128xf32>
    %118 = tpu.matmul %116, %117, %cst_33 {dimension_numbers = #tpu.dot_dimension_numbers<[1], [0], [0], [1], [0, 0, 1, 1], [], []>} : vector<8x128xbf16>, vector<128x128xbf16>, vector<8x128xf32> -> vector<8x128xf32>
    %c0_34 = arith.constant 0 : index
    %c0_35 = arith.constant 0 : index
    %119 = vector.load %arg6[%c0_34, %c0_35] : memref<1x128xf32, #tpu.memory_space<vmem>>, vector<1x128xf32>
    %120 = vector.broadcast %119 : vector<1x128xf32> to vector<8x128xf32>
    %121 = arith.addf %118, %120 : vector<8x128xf32>
    %122 = arith.addf %1, %121 : vector<8x128xf32>
    %c0_36 = arith.constant 0 : index
    %c0_37 = arith.constant 0 : index
    %123 = vector.load %arg7[%c0_36, %c0_37] : memref<1x128xf32, #tpu.memory_space<vmem>>, vector<1x128xf32>
    %c0_38 = arith.constant 0 : index
    %c0_39 = arith.constant 0 : index
    %124 = vector.load %arg8[%c0_38, %c0_39] : memref<1x128xf32, #tpu.memory_space<vmem>>, vector<1x128xf32>
    %cst_40 = arith.constant dense<0.000000e+00> : vector<8xf32>
    %125 = vector.multi_reduction <add>, %122, %cst_40 [1] : vector<8x128xf32> to vector<8xf32>
    %126 = vector.shape_cast %125 : vector<8xf32> to vector<8x1xf32>
    %cst_41 = arith.constant 1.280000e+02 : f32
    %127 = vector.broadcast %cst_41 : f32 to vector<8x1xf32>
    %128 = arith.divf %126, %127 : vector<8x1xf32>
    %129 = vector.broadcast %128 : vector<8x1xf32> to vector<8x128xf32>
    %130 = arith.subf %122, %129 : vector<8x128xf32>
    %131 = arith.mulf %130, %130 : vector<8x128xf32>
    %cst_42 = arith.constant dense<0.000000e+00> : vector<8xf32>
    %132 = vector.multi_reduction <add>, %131, %cst_42 [1] : vector<8x128xf32> to vector<8xf32>
    %133 = vector.shape_cast %132 : vector<8xf32> to vector<8x1xf32>
    %cst_43 = arith.constant 1.280000e+02 : f32
    %134 = vector.broadcast %cst_43 : f32 to vector<8x1xf32>
    %135 = arith.divf %133, %134 : vector<8x1xf32>
    %136 = vector.broadcast %128 : vector<8x1xf32> to vector<8x128xf32>
    %137 = arith.subf %122, %136 : vector<8x128xf32>
    %cst_44 = arith.constant 9.99999974E-6 : f32
    %138 = vector.broadcast %cst_44 : f32 to vector<8x1xf32>
    %139 = arith.addf %135, %138 : vector<8x1xf32>
    %140 = math.rsqrt %139 : vector<8x1xf32>
    %141 = vector.broadcast %140 : vector<8x1xf32> to vector<8x128xf32>
    %142 = arith.mulf %137, %141 : vector<8x128xf32>
    %143 = vector.broadcast %123 : vector<1x128xf32> to vector<8x128xf32>
    %144 = arith.mulf %142, %143 : vector<8x128xf32>
    %145 = vector.broadcast %124 : vector<1x128xf32> to vector<8x128xf32>
    %146 = arith.addf %144, %145 : vector<8x128xf32>
    %147 = arith.truncf %146 : vector<8x128xf32> to vector<8x128xbf16>
    %c0_45 = arith.constant 0 : index
    %c0_46 = arith.constant 0 : index
    %148 = vector.load %arg9[%c0_45, %c0_46] : memref<128x512xbf16, #tpu.memory_space<vmem>>, vector<128x512xbf16>
    %cst_47 = arith.constant dense<0.000000e+00> : vector<8x512xf32>
    %149 = tpu.matmul %147, %148, %cst_47 {dimension_numbers = #tpu.dot_dimension_numbers<[1], [0], [0], [1], [0, 0, 1, 1], [], []>} : vector<8x128xbf16>, vector<128x512xbf16>, vector<8x512xf32> -> vector<8x512xf32>
    %c0_48 = arith.constant 0 : index
    %c0_49 = arith.constant 0 : index
    %150 = vector.load %arg10[%c0_48, %c0_49] : memref<1x512xf32, #tpu.memory_space<vmem>>, vector<1x512xf32>
    %151 = vector.broadcast %150 : vector<1x512xf32> to vector<8x512xf32>
    %152 = arith.addf %149, %151 : vector<8x512xf32>
    %cst_50 = arith.constant 0.000000e+00 : f32
    %153 = vector.broadcast %cst_50 : f32 to vector<8x512xf32>
    %154 = arith.maximumf %152, %153 : vector<8x512xf32>
    %155 = arith.truncf %154 : vector<8x512xf32> to vector<8x512xbf16>
    %c0_51 = arith.constant 0 : index
    %c0_52 = arith.constant 0 : index
    %156 = vector.load %arg11[%c0_51, %c0_52] : memref<512x128xbf16, #tpu.memory_space<vmem>>, vector<512x128xbf16>
    %cst_53 = arith.constant dense<0.000000e+00> : vector<8x128xf32>
    %157 = tpu.matmul %155, %156, %cst_53 {dimension_numbers = #tpu.dot_dimension_numbers<[1], [0], [0], [1], [0, 0, 1, 1], [], []>} : vector<8x512xbf16>, vector<512x128xbf16>, vector<8x128xf32> -> vector<8x128xf32>
    %c0_54 = arith.constant 0 : index
    %c0_55 = arith.constant 0 : index
    %158 = vector.load %arg12[%c0_54, %c0_55] : memref<1x128xf32, #tpu.memory_space<vmem>>, vector<1x128xf32>
    %159 = vector.broadcast %158 : vector<1x128xf32> to vector<8x128xf32>
    %160 = arith.addf %157, %159 : vector<8x128xf32>
    %161 = arith.addf %122, %160 : vector<8x128xf32>
    %162 = vector.shape_cast %161 : vector<8x128xf32> to vector<1x8x128xf32>
    %c0_56 = arith.constant 0 : index
    %c0_57 = arith.constant 0 : index
    %c0_58 = arith.constant 0 : index
    %163 = vector.load %arg13[%c0_56, %c0_57, %c0_58] : memref<1x8x128xf32, #tpu.memory_space<vmem>>, vector<1x8x128xf32>
    tpu.vector_store %arg13[%c0_56, %c0_57, %c0_58], %162 {strides = array<i32>} : memref<1x8x128xf32, #tpu.memory_space<vmem>>, vector<1x8x128xf32>,
    return
  }
  func.func @transform_0(%arg0: i32) -> (i32, i32, i32) {
    %c0_i32 = arith.constant 0 : i32
    %c0_i32_0 = arith.constant 0 : i32
    %c0_i32_1 = arith.constant 0 : i32
    return %arg0, %c0_i32, %c0_i32_0 : i32, i32, i32
  }
  func.func @transform_1(%arg0: i32) -> (i32, i32) {
    %c0_i32 = arith.constant 0 : i32
    %c0_i32_0 = arith.constant 0 : i32
    %c0_i32_1 = arith.constant 0 : i32
    return %c0_i32, %c0_i32_0 : i32, i32
  }
  func.func @transform_2(%arg0: i32) -> (i32, i32) {
    %c0_i32 = arith.constant 0 : i32
    %c0_i32_0 = arith.constant 0 : i32
    %c0_i32_1 = arith.constant 0 : i32
    return %c0_i32, %c0_i32_0 : i32, i32
  }
  func.func @transform_3(%arg0: i32) -> (i32, i32) {
    %c0_i32 = arith.constant 0 : i32
    %c0_i32_0 = arith.constant 0 : i32
    %c0_i32_1 = arith.constant 0 : i32
    return %c0_i32, %c0_i32_0 : i32, i32
  }
  func.func @transform_4(%arg0: i32) -> (i32, i32) {
    %c0_i32 = arith.constant 0 : i32
    %c0_i32_0 = arith.constant 0 : i32
    %c0_i32_1 = arith.constant 0 : i32
    return %c0_i32, %c0_i32_0 : i32, i32
  }
  func.func @transform_5(%arg0: i32) -> (i32, i32) {
    %c0_i32 = arith.constant 0 : i32
    %c0_i32_0 = arith.constant 0 : i32
    %c0_i32_1 = arith.constant 0 : i32
    return %c0_i32, %c0_i32_0 : i32, i32
  }
  func.func @transform_6(%arg0: i32) -> (i32, i32) {
    %c0_i32 = arith.constant 0 : i32
    %c0_i32_0 = arith.constant 0 : i32
    %c0_i32_1 = arith.constant 0 : i32
    return %c0_i32, %c0_i32_0 : i32, i32
  }
  func.func @transform_7(%arg0: i32) -> (i32, i32) {
    %c0_i32 = arith.constant 0 : i32
    %c0_i32_0 = arith.constant 0 : i32
    %c0_i32_1 = arith.constant 0 : i32
    return %c0_i32, %c0_i32_0 : i32, i32
  }
  func.func @transform_8(%arg0: i32) -> (i32, i32) {
    %c0_i32 = arith.constant 0 : i32
    %c0_i32_0 = arith.constant 0 : i32
    %c0_i32_1 = arith.constant 0 : i32
    return %c0_i32, %c0_i32_0 : i32, i32
  }
  func.func @transform_9(%arg0: i32) -> (i32, i32) {
    %c0_i32 = arith.constant 0 : i32
    %c0_i32_0 = arith.constant 0 : i32
    %c0_i32_1 = arith.constant 0 : i32
    return %c0_i32, %c0_i32_0 : i32, i32
  }
  func.func @transform_10(%arg0: i32) -> (i32, i32) {
    %c0_i32 = arith.constant 0 : i32
    %c0_i32_0 = arith.constant 0 : i32
    %c0_i32_1 = arith.constant 0 : i32
    return %c0_i32, %c0_i32_0 : i32, i32
  }
  func.func @transform_11(%arg0: i32) -> (i32, i32) {
    %c0_i32 = arith.constant 0 : i32
    %c0_i32_0 = arith.constant 0 : i32
    %c0_i32_1 = arith.constant 0 : i32
    return %c0_i32, %c0_i32_0 : i32, i32
  }
  func.func @transform_12(%arg0: i32) -> (i32, i32, i32) {
    %c0_i32 = arith.constant 0 : i32
    %c0_i32_0 = arith.constant 0 : i32
    %c0_i32_1 = arith.constant 0 : i32
    return %arg0, %c0_i32, %c0_i32_0 : i32, i32, i32
  }
}

</mosaic_0001>

<bundles_post_ra>
// kernel: tpu_custom_call.1
= control target key start
LH: loop header
LB: loop body
LE: loop exit
PB: predicated region body
PF: predicated region fallthrough
CT: control target
= control target key end

     0   :  { %s3977_s0 = inlined_call_operand.hbm [shape: f32[2,8,128], index: 0, kind: input, shape index: {}]   ;;  %s3978_s1 = inlined_call_operand.hbm [shape: f32[1,128], index: 1, kind: input, shape index: {}]   ;;  %s3979_s2 = inlined_call_operand.hbm [shape: f32[1,128], index: 2, kind: input, shape index: {}]   ;;  %s3980_s3 = inlined_call_operand.hbm [shape: bf16[128,384], index: 3, kind: input, shape index: {}]   ;;  %s3981_s4 = inlined_call_operand.hbm [shape: bf16[128,128], index: 4, kind: input, shape index: {}]   ;;  %s3982_s5 = inlined_call_operand.hbm [shape: f32[1,128], index: 5, kind: input, shape index: {}]   ;;  %s3983_s6 = inlined_call_operand.hbm [shape: f32[1,128], index: 6, kind: input, shape index: {}]   ;;  %s3984_s7 = inlined_call_operand.hbm [shape: f32[1,128], index: 7, kind: input, shape index: {}]   ;;  %s3985_s8 = inlined_call_operand.hbm [shape: bf16[128,512], index: 8, kind: input, shape index: {}]   ;;  %s3986_s9 = inlined_call_operand.hbm [shape: f32[1,512], index: 9, kind: input, shape index: {}]   ;;  %s3987_s10 = inlined_call_operand.hbm [shape: bf16[512,128], index: 10, kind: input, shape index: {}]   ;;  %s3988_s11 = inlined_call_operand.hbm [shape: f32[1,128], index: 11, kind: input, shape index: {}]   ;;  %s3989_s12 = inlined_call_operand.hbm [shape: f32[2,8,128], index: 12, kind: output, shape index: {}]  }
   0x1   :  { %3997 = sst [smem:[#allocation32_spill]] %s3978_s1 }
   0x2   :  { %3998 = sst [smem:[#allocation33_spill]] %s3979_s2 }
   0x3   :  { %3999 = sst [smem:[#allocation34_spill]] %s3980_s3 }
   0x4   :  { %4000 = sst [smem:[#allocation35_spill]] %s3982_s5 }
   0x5   :  { %4001 = sst [smem:[#allocation36_spill]] %s3989_s12 }
   0x6   :  { %17 = vsyncpa [#allocation3], 0 }
   0x7   :  { %19 = vsyncpa [#allocation3 + $0x1], 0 }
   0x8   :  { %20 = vsyncpa [#allocation6], 0 }
   0x9   :  { %21 = vsyncpa [#allocation9], 0 }
   0xa   :  { %22 = vsyncpa [#allocation12], 0 }
   0xb   :  { %23 = vsyncpa [#allocation15], 0 }
   0xc   :  { %24 = vsyncpa [#allocation18], 0 }
   0xd   :  { %25 = vsyncpa [#allocation21], 0 }
   0xe   :  { %26 = vsyncpa [#allocation4], 0 }
   0xf   :  { %28 = vsyncpa [#allocation4 + $0x1], 0  ;;  %s3433_s21 = smov 0   ;;  %s3435_s22 = smov 0  }
  0x10   :  { %s3437_s23 = smov 0   ;;  %s3439_s24 = smov 0  }
  0x11 LB: > { %s3342_s25 = smov [#allocation5]   ;;  %s3454_s27 = sadd.s32 4294967295, %s3340_s24   ;;  %s3340_s24 = sphi %s3439_s24, %s4038_s24   ;;  %s3336_s23 = sphi %s3437_s23, %s4037_s23   ;;  %s3332_s22 = sphi %s3435_s22, %s4036_s22   ;;  %s3328_s21 = sphi %s3433_s21, %s4035_s21  }
  0x12   : > { %s335_s26 = sshll.u32 %s3342_s25, 4  ;;  %p2293_p0 = scmp.ge.s32.totalorder %s3340_s24, 1  ;;  %s3459_s26 = int_to_ptr.vmem [resolvable:$true] %s335_s26 }
  0x13   : > { %p3992_p1 = scmp.eq.s32.totalorder %s3454_s27, 0  ;;  %p322_p2 = scmp.lt.s32.totalorder %s3340_s24, 3 }
  0x14   : > { %s3343_s29 = smov [#allocation8]   ;;  %s3344_s14 = smov [#allocation11]  }
  0x15   : > { %p3461_p3 = pnand %p2293_p0, %p322_p2  ;;  %s356_s30 = sshll.u32 %s3343_s29, 4  ;;  %s3468_s30 = int_to_ptr.vmem [resolvable:$true] %s356_s30 }
  0x16   : > { %s383_s15 = sshll.u32 %s3344_s14, 4  ;;  %s4005_s1 = sld [smem:[#allocation32_spill]]  ;;  %s3476_s15 = int_to_ptr.vmem [resolvable:$true] %s383_s15 }
  0x17   : > { %s4002_s28 = scalar_select %p3461_p3, 1, 0 }
  0x18   : > { %p2650_p5 = pneg %p3461_p3 }
  0x19   : > { %4003 = sst [smem:[#allocation31_spill]] %s4002_s28 }
  0x1a   : > { %p3472_p6 = pnand %p2650_p5, %p3992_p1 }
  0x1c   : > { %s2912_s18 = scalar_lea.hbm %s4005_s1, 16  ;;  %p3486_p8 = pneg %p3472_p6 }
  0x1d   : > { %p2913_p7 = scmp.ne.s32.totalorder %s4005_s1, %s2912_s18  ;;  %p2919_p11 = scmp.lt.u32.totalorder %s2912_s18, %s4005_s1 }
  0x1f   : > { %p2915_p9 = pnand %p3486_p8, %p2913_p7 }
  0x21   : > { %p2916_p10 = pneg %p2915_p9 }
  0x23   : > { %p2921_p12 = pnand %p2919_p11, %p2916_p10 }
  0x25   : > { %2924 = shalt.err (!%p2921_p12)
}
  0x26   : > { %s2925_s16 = scalar_lea.vmem %s3459_s26, 16  ;;  %s2932_s17 = scalar_lea.vmem %s3459_s26, 32 }
  0x27   : > { %p2926_p13 = scmp.ne.s32.totalorder %s3459_s26, %s2925_s16  ;;  %p2933_p5 = scmp.lt.s32.totalorder %s3459_s26, %s3459_s26 }
  0x28   : > { %p2934_p7 = scmp.lt.s32.totalorder %s2932_s17, %s2925_s16 }
  0x29   : > { %p2928_p0 = pnand %p2926_p13, %p3486_p8 }
  0x2a   : > { %p2935_p9 = por %p2934_p7, %p2933_p5 }
  0x2b   : > { %p2929_p2 = pneg %p2928_p0 }
  0x2d   : > { %p2936_p4 = pnand %p2935_p9, %p2929_p2 }
  0x2f   : > { %2939 = shalt.err (!%p2936_p4)
}
  0x30   : > { %2653 = dma.hbm_to_vmem [thread:$0]  (!%p3472_p6), %s4005_s1, 16, %s3459_s26, [#allocation6]  }
  0x31   : > { %s4007_s3 = sld [smem:[#allocation34_spill]] }
  0x37   : > { %s2940_s14 = scalar_lea.hbm %s4007_s3, 3072 }
  0x38   : > { %p2941_p10 = scmp.ne.s32.totalorder %s4007_s3, %s2940_s14  ;;  %p2947_p4 = scmp.lt.u32.totalorder %s2940_s14, %s4007_s3 }
  0x3a   : > { %p2943_p11 = pnand %p2941_p10, %p3486_p8 }
  0x3c   : > { %p2944_p12 = pneg %p2943_p11 }
  0x3e   : > { %p2949_p13 = pnand %p2947_p4, %p2944_p12 }
  0x40   : > { %2952 = shalt.err (!%p2949_p13)
}
  0x41   : > { %s2953_s26 = scalar_lea.vmem %s3468_s30, 3072  ;;  %p2961_p7 = scmp.lt.s32.totalorder %s3468_s30, %s3468_s30 }
  0x42   : > { %p2954_p0 = scmp.ne.s32.totalorder %s3468_s30, %s2953_s26  ;;  %p2962_p9 = scmp.lt.s32.totalorder %s2953_s26, %s2953_s26 }
  0x44   : > { %p2956_p2 = pnand %p2954_p0, %p3486_p8  ;;  %p2963_p10 = por %p2962_p9, %p2961_p7 }
  0x46   : > { %p2957_p5 = pneg %p2956_p2 }
  0x48   : > { %p2964_p11 = pnand %p2963_p10, %p2957_p5 }
  0x4a   : > { %2967 = shalt.err (!%p2964_p11)
}
  0x4b   : > { %s3345_s12 = smov 192   ;;  %s3346_s28 = smov 12  }
  0x4c   : > { %2659 = dma.hbm_to_vmem [thread:$0]  (!%p3472_p6), %s4007_s3, 3072, %s3468_s30, [#allocation9], %s3345_s12, %s3345_s12, %s3346_s28  }
  0x4d   : > { %s4008_s5 = sld [smem:[#allocation35_spill]] }
  0x53   : > { %s2968_s14 = scalar_lea.hbm %s4008_s5, 16 }
  0x54   : > { %p2969_p12 = scmp.ne.s32.totalorder %s4008_s5, %s2968_s14  ;;  %p2975_p0 = scmp.lt.u32.totalorder %s2968_s14, %s4008_s5 }
  0x56   : > { %p2971_p4 = pnand %p2969_p12, %p3486_p8 }
  0x58   : > { %p2972_p13 = pneg %p2971_p4 }
  0x5a   : > { %p2977_p2 = pnand %p2975_p0, %p2972_p13 }
  0x5c   : > { %2980 = shalt.err (!%p2977_p2)
}
  0x5d   : > { %s2981_s30 = scalar_lea.vmem %s3476_s15, 16  ;;  %s2988_s12 = scalar_lea.vmem %s3476_s15, 32 }
  0x5e   : > { %p2982_p5 = scmp.ne.s32.totalorder %s3476_s15, %s2981_s30  ;;  %p2989_p10 = scmp.lt.s32.totalorder %s3476_s15, %s3476_s15 }
  0x5f   : > { %p2990_p11 = scmp.lt.s32.totalorder %s2988_s12, %s2981_s30 }
  0x60   : > { %p2984_p7 = pnand %p2982_p5, %p3486_p8 }
  0x61   : > { %p2991_p12 = por %p2990_p11, %p2989_p10 }
  0x62   : > { %p2985_p9 = pneg %p2984_p7 }
  0x64   : > { %p2992_p4 = pnand %p2991_p12, %p2985_p9 }
  0x66   : > { %2995 = shalt.err (!%p2992_p4)
}
  0x67   : > { %2665 = dma.hbm_to_vmem [thread:$0]  (!%p3472_p6), %s4008_s5, 16, %s3476_s15, [#allocation12]  }
  0x68   : > { %s3347_s18 = smov [#allocation14]   ;;  %s3348_s20 = smov [#allocation17]  }
  0x69   : > { %s405_s19 = sshll.u32 %s3347_s18, 4  ;;  %s429_s29 = sshll.u32 %s3348_s20, 4  ;;  %s406_s19 = int_to_ptr.vmem [resolvable:$true] %s405_s19  ;;  %s430_s29 = int_to_ptr.vmem [resolvable:$true] %s429_s29 }
  0x6a   : > { %s2996_s17 = scalar_lea.hbm %s3984_s7, 16 }
  0x6b   : > { %p2997_p13 = scmp.ne.s32.totalorder %s3984_s7, %s2996_s17  ;;  %p3003_p5 = scmp.lt.u32.totalorder %s2996_s17, %s3984_s7 }
  0x6d   : > { %p2999_p0 = pnand %p2997_p13, %p3486_p8 }
  0x6f   : > { %p3000_p2 = pneg %p2999_p0 }
  0x71   : > { %p3005_p7 = pnand %p3003_p5, %p3000_p2 }
  0x73   : > { %3008 = shalt.err (!%p3005_p7)
}
  0x74   : > { %s3009_s15 = scalar_lea.vmem %s406_s19, 16  ;;  %s3016_s28 = scalar_lea.vmem %s406_s19, 32 }
  0x75   : > { %p3010_p9 = scmp.ne.s32.totalorder %s406_s19, %s3009_s15  ;;  %p3017_p12 = scmp.lt.s32.totalorder %s406_s19, %s406_s19 }
  0x76   : > { %p3018_p4 = scmp.lt.s32.totalorder %s3016_s28, %s3009_s15 }
  0x77   : > { %p3012_p10 = pnand %p3010_p9, %p3486_p8 }
  0x78   : > { %p3019_p1 = por %p3018_p4, %p3017_p12 }
  0x79   : > { %p3013_p11 = pneg %p3012_p10 }
  0x7b   : > { %p3020_p3 = pnand %p3019_p1, %p3013_p11 }
  0x7d   : > { %3023 = shalt.err (!%p3020_p3)
}
  0x7e   : > { %2671 = dma.hbm_to_vmem [thread:$0]  (!%p3472_p6), %s3984_s7, 16, %s406_s19, [#allocation15]  }
  0x7f   : > { %s3024_s17 = scalar_lea.hbm %s3986_s9, 64 }
  0x80   : > { %p3025_p13 = scmp.ne.s32.totalorder %s3986_s9, %s3024_s17  ;;  %p3031_p3 = scmp.lt.u32.totalorder %s3024_s17, %s3986_s9 }
  0x82   : > { %p3027_p0 = pnand %p3025_p13, %p3486_p8 }
  0x84   : > { %p3028_p1 = pneg %p3027_p0 }
  0x86   : > { %p3033_p2 = pnand %p3031_p3, %p3028_p1 }
  0x88   : > { %3036 = shalt.err (!%p3033_p2)
}
  0x89   : > { %s3037_s15 = scalar_lea.vmem %s430_s29, 64  ;;  %p3045_p10 = scmp.lt.s32.totalorder %s430_s29, %s430_s29 }
  0x8a   : > { %p3038_p5 = scmp.ne.s32.totalorder %s430_s29, %s3037_s15  ;;  %p3046_p11 = scmp.lt.s32.totalorder %s3037_s15, %s3037_s15 }
  0x8c   : > { %p3040_p7 = pnand %p3038_p5, %p3486_p8  ;;  %p3047_p12 = por %p3046_p11, %p3045_p10 }
  0x8e   : > { %p3041_p9 = pneg %p3040_p7 }
  0x90   : > { %p3048_p4 = pnand %p3047_p12, %p3041_p9 }
  0x92   : > { %3051 = shalt.err (!%p3048_p4)
}
  0x93   : > { %2677 = dma.hbm_to_vmem [thread:$0]  (!%p3472_p6), %s3986_s9, 64, %s430_s29, [#allocation18]  }
  0x94   : > { %s3349_s18 = smov [#allocation7]   ;;  %s3350_s14 = smov [#allocation10]  }
  0x95   : > { %s346_s20 = sshll.u32 %s3349_s18, 4  ;;  %s369_s16 = sshll.u32 %s3350_s14, 4  ;;  %s347_s20 = int_to_ptr.vmem [resolvable:$true] %s346_s20  ;;  %s370_s16 = int_to_ptr.vmem [resolvable:$true] %s369_s16 }
  0x96   : > { %s4009_s2 = sld [smem:[#allocation33_spill]] }
  0x9c   : > { %s3052_s30 = scalar_lea.hbm %s4009_s2, 16 }
  0x9d   : > { %p3053_p13 = scmp.ne.s32.totalorder %s4009_s2, %s3052_s30  ;;  %p3059_p3 = scmp.lt.u32.totalorder %s3052_s30, %s4009_s2 }
  0x9f   : > { %p3055_p0 = pnand %p3053_p13, %p3486_p8 }
  0xa1   : > { %p3056_p1 = pneg %p3055_p0 }
  0xa3   : > { %p3061_p2 = pnand %p3059_p3, %p3056_p1 }
  0xa5   : > { %3064 = shalt.err (!%p3061_p2)
}
  0xa6   : > { %s3065_s29 = scalar_lea.vmem %s347_s20, 16  ;;  %s3072_s28 = scalar_lea.vmem %s347_s20, 32 }
  0xa7   : > { %p3066_p5 = scmp.ne.s32.totalorder %s347_s20, %s3065_s29  ;;  %p3073_p10 = scmp.lt.s32.totalorder %s347_s20, %s347_s20 }
  0xa8   : > { %p3074_p11 = scmp.lt.s32.totalorder %s3072_s28, %s3065_s29 }
  0xa9   : > { %p3068_p7 = pnand %p3066_p5, %p3486_p8 }
  0xaa   : > { %p3075_p12 = por %p3074_p11, %p3073_p10 }
  0xab   : > { %p3069_p9 = pneg %p3068_p7 }
  0xad   : > { %p3076_p4 = pnand %p3075_p12, %p3069_p9 }
  0xaf   : > { %3079 = shalt.err (!%p3076_p4)
}
  0xb0   : > { %2656 = dma.hbm_to_vmem [thread:$0]  (!%p3472_p6), %s4009_s2, 16, %s347_s20, [#allocation6]  }
  0xb1   : > { %s3080_s30 = scalar_lea.hbm %s3981_s4, 1024 }
  0xb2   : > { %p3081_p13 = scmp.ne.s32.totalorder %s3981_s4, %s3080_s30  ;;  %p3087_p3 = scmp.lt.u32.totalorder %s3080_s30, %s3981_s4 }
  0xb4   : > { %p3083_p0 = pnand %p3081_p13, %p3486_p8 }
  0xb6   : > { %p3084_p1 = pneg %p3083_p0 }
  0xb8   : > { %p3089_p2 = pnand %p3087_p3, %p3084_p1 }
  0xba   : > { %3092 = shalt.err (!%p3089_p2)
}
  0xbb   : > { %s3093_s29 = scalar_lea.vmem %s370_s16, 1024  ;;  %p3101_p10 = scmp.lt.s32.totalorder %s370_s16, %s370_s16 }
  0xbc   : > { %p3094_p5 = scmp.ne.s32.totalorder %s370_s16, %s3093_s29  ;;  %p3102_p11 = scmp.lt.s32.totalorder %s3093_s29, %s3093_s29 }
  0xbe   : > { %p3096_p7 = pnand %p3094_p5, %p3486_p8  ;;  %p3103_p12 = por %p3102_p11, %p3101_p10 }
  0xc0   : > { %p3097_p9 = pneg %p3096_p7 }
  0xc2   : > { %p3104_p4 = pnand %p3103_p12, %p3097_p9 }
  0xc4   : > { %3107 = shalt.err (!%p3104_p4)
}
  0xc5   : > { %s3994_s20 = smov 64   ;;  %s3995_s28 = smov 4  }
  0xc6   : > { %2662 = dma.hbm_to_vmem [thread:$0]  (!%p3472_p6), %s3981_s4, 1024, %s370_s16, [#allocation9], %s3994_s20, %s3994_s20, %s3995_s28  }
  0xc7   : > { %s3353_s17 = smov [#allocation13]   ;;  %s3354_s30 = smov [#allocation16]  }
  0xc8   : > { %s394_s26 = sshll.u32 %s3353_s17, 4  ;;  %s415_s12 = sshll.u32 %s3354_s30, 4  ;;  %s395_s26 = int_to_ptr.vmem [resolvable:$true] %s394_s26  ;;  %s416_s12 = int_to_ptr.vmem [resolvable:$true] %s415_s12 }
  0xc9   : > { %s3108_s19 = scalar_lea.hbm %s3983_s6, 16 }
  0xca   : > { %p3109_p13 = scmp.ne.s32.totalorder %s3983_s6, %s3108_s19  ;;  %p3115_p3 = scmp.lt.u32.totalorder %s3108_s19, %s3983_s6 }
  0xcc   : > { %p3111_p0 = pnand %p3109_p13, %p3486_p8 }
  0xce   : > { %p3112_p1 = pneg %p3111_p0 }
  0xd0   : > { %p3117_p2 = pnand %p3115_p3, %p3112_p1 }
  0xd2   : > { %3120 = shalt.err (!%p3117_p2)
}
  0xd3   : > { %s3121_s16 = scalar_lea.vmem %s395_s26, 16  ;;  %s3128_s18 = scalar_lea.vmem %s395_s26, 32 }
  0xd4   : > { %p3122_p5 = scmp.ne.s32.totalorder %s395_s26, %s3121_s16  ;;  %p3129_p10 = scmp.lt.s32.totalorder %s395_s26, %s395_s26 }
  0xd5   : > { %p3130_p11 = scmp.lt.s32.totalorder %s3128_s18, %s3121_s16 }
  0xd6   : > { %p3124_p7 = pnand %p3122_p5, %p3486_p8 }
  0xd7   : > { %p3131_p12 = por %p3130_p11, %p3129_p10 }
  0xd8   : > { %p3125_p9 = pneg %p3124_p7 }
  0xda   : > { %p3132_p4 = pnand %p3131_p12, %p3125_p9 }
  0xdc   : > { %3135 = shalt.err (!%p3132_p4)
}
  0xdd   : > { %2668 = dma.hbm_to_vmem [thread:$0]  (!%p3472_p6), %s3983_s6, 16, %s395_s26, [#allocation12]  }
  0xde   : > { %s3136_s17 = scalar_lea.hbm %s3985_s8, 4096 }
  0xdf   : > { %p3137_p13 = scmp.ne.s32.totalorder %s3985_s8, %s3136_s17  ;;  %p3143_p3 = scmp.lt.u32.totalorder %s3136_s17, %s3985_s8 }
  0xe1   : > { %p3139_p0 = pnand %p3137_p13, %p3486_p8 }
  0xe3   : > { %p3140_p1 = pneg %p3139_p0 }
  0xe5   : > { %p3145_p2 = pnand %p3143_p3, %p3140_p1 }
  0xe7   : > { %3148 = shalt.err (!%p3145_p2)
}
  0xe8   : > { %s3149_s29 = scalar_lea.vmem %s416_s12, 4096  ;;  %p3157_p10 = scmp.lt.s32.totalorder %s416_s12, %s416_s12 }
  0xe9   : > { %p3150_p5 = scmp.ne.s32.totalorder %s416_s12, %s3149_s29  ;;  %p3158_p11 = scmp.lt.s32.totalorder %s3149_s29, %s3149_s29 }
  0xeb   : > { %p3152_p7 = pnand %p3150_p5, %p3486_p8  ;;  %p3159_p12 = por %p3158_p11, %p3157_p10 }
  0xed   : > { %p3153_p9 = pneg %p3152_p7 }
  0xef   : > { %p3160_p4 = pnand %p3159_p12, %p3153_p9 }
  0xf1   : > { %3163 = shalt.err (!%p3160_p4)
}
  0xf2   : > { %s3355_s26 = smov 256   ;;  %s3356_s16 = smov 16  }
  0xf3   : > { %2674 = dma.hbm_to_vmem [thread:$0]  (!%p3472_p6), %s3985_s8, 4096, %s416_s12, [#allocation15], %s3355_s26, %s3355_s26, %s3356_s16  }
  0xf4   : > { %s3357_s14 = smov [#allocation19]   ;;  %s3358_s5 = smov [#allocation20]  }
  0xf5   : > { %s439_s3 = sshll.u32 %s3357_s14, 4  ;;  %s453_s17 = sshll.u32 %s3358_s5, 4  ;;  %s440_s3 = int_to_ptr.vmem [resolvable:$true] %s439_s3  ;;  %s454_s17 = int_to_ptr.vmem [resolvable:$true] %s453_s17 }
  0xf6   : > { %s3164_s15 = scalar_lea.hbm %s3987_s10, 4096 }
  0xf7   : > { %p3165_p13 = scmp.ne.s32.totalorder %s3987_s10, %s3164_s15  ;;  %p3171_p3 = scmp.lt.u32.totalorder %s3164_s15, %s3987_s10 }
  0xf9   : > { %p3167_p0 = pnand %p3165_p13, %p3486_p8 }
  0xfb   : > { %p3168_p1 = pneg %p3167_p0 }
  0xfd   : > { %p3173_p2 = pnand %p3171_p3, %p3168_p1 }
  0xff   : > { %3176 = shalt.err (!%p3173_p2)
}
 0x100   : > { %s3177_s12 = scalar_lea.vmem %s440_s3, 4096  ;;  %p3185_p10 = scmp.lt.s32.totalorder %s440_s3, %s440_s3 }
 0x101   : > { %p3178_p5 = scmp.ne.s32.totalorder %s440_s3, %s3177_s12  ;;  %p3186_p11 = scmp.lt.s32.totalorder %s3177_s12, %s3177_s12 }
 0x103   : > { %p3180_p7 = pnand %p3178_p5, %p3486_p8  ;;  %p3187_p12 = por %p3186_p11, %p3185_p10 }
 0x105   : > { %p3181_p9 = pneg %p3180_p7 }
 0x107   : > { %p3188_p4 = pnand %p3187_p12, %p3181_p9 }
 0x109   : > { %3191 = shalt.err (!%p3188_p4)
}
 0x10a   : > { %s4010_s26 = smov 4   ;;  %s4011_s16 = smov 64  }
 0x10b   : > { %2680 = dma.hbm_to_vmem [thread:$0]  (!%p3472_p6), %s3987_s10, 4096, %s440_s3, [#allocation18], %s4011_s16, %s4011_s16, %s4010_s26  }
 0x10c   : > { %s3192_s14 = scalar_lea.hbm %s3988_s11, 16 }
 0x10d   : > { %p3193_p13 = scmp.ne.s32.totalorder %s3988_s11, %s3192_s14  ;;  %p3199_p3 = scmp.lt.u32.totalorder %s3192_s14, %s3988_s11 }
 0x10f   : > { %p3195_p0 = pnand %p3193_p13, %p3486_p8 }
 0x111   : > { %p3196_p1 = pneg %p3195_p0 }
 0x113   : > { %p3201_p2 = pnand %p3199_p3, %p3196_p1 }
 0x115   : > { %3204 = shalt.err (!%p3201_p2)
}
 0x116   : > { %s3205_s19 = scalar_lea.vmem %s454_s17, 16  ;;  %s3212_s3 = scalar_lea.vmem %s454_s17, 32 }
 0x117   : > { %p3206_p5 = scmp.ne.s32.totalorder %s454_s17, %s3205_s19  ;;  %p3213_p10 = scmp.lt.s32.totalorder %s454_s17, %s454_s17 }
 0x118   : > { %p3214_p11 = scmp.lt.s32.totalorder %s3212_s3, %s3205_s19 }
 0x119   : > { %p3208_p7 = pnand %p3206_p5, %p3486_p8 }
 0x11a   : > { %p3215_p12 = por %p3214_p11, %p3213_p10 }
 0x11b   : > { %p3209_p9 = pneg %p3208_p7 }
 0x11d   : > { %p3216_p4 = pnand %p3215_p12, %p3209_p9 }
 0x11f   : > { %3219 = shalt.err (!%p3216_p4)
}
 0x120   : > { %2683 = dma.hbm_to_vmem [thread:$0]  (!%p3472_p6), %s3988_s11, 16, %s454_s17, [#allocation21]  }
 0x121   : > { %s2292_s25 = sadd.s32 4294967294, %s3340_s24   ;;  %s3707_s13 = sadd.s32 1, %s3340_s24  }
 0x122   : > { %s41_s26 = sadd.s32 1, %s3336_s23  ;;  %s38_s16 = ssub.s32 %s3340_s24, %s3707_s13 }
 0x123   : > { %p48_p8 = scmp.ne.s32.totalorder %s3336_s23, %s3332_s22  ;;  %p39_p13 = scmp.eq.s32.totalorder %s38_s16, 0 }
 0x124   : > { %p49_p0 = scmp.eq.s32.totalorder %s3340_s24, 0  ;;  %p54_p1 = scmp.ne.s32.totalorder %s3332_s22, %s3328_s21 }
 0x125   : > { %p309_p3 = scmp.eq.s32.totalorder %s3454_s27, 1  ;;  %p4012_p5 = scmp.eq.s32.totalorder %s3454_s27, 0 }
 0x126   : > { %s3719_s20 = scalar_select %p39_p13, %s3336_s23, %s41_s26  }
 0x127   : > { %p50_p2 = por %p49_p0, %p48_p8  ;;  %p3723_p7 = por %p4012_p5, %p54_p1 }
 0x128   : > { %p3727_p6 = por %p309_p3, %p48_p8  ;;  %p315_p9 = scmp.eq.s32.totalorder %s2292_s25, 1 }
 0x129   : > { %p2703_p10 = scmp.lt.s32.totalorder %s3340_s24, 2  ;;  %s464_s18 = sand.u32 1, %s3336_s23  }
 0x12a   : > { %s4014_s17 = scalar_select %p3727_p6, 1, 0 }
 0x12b   : > { %p3733_p11 = por %p315_p9, %p54_p1  ;;  %s2306_s14 = sshll.u32 %s464_s18, 3 }
 0x12c   : > { %s2307_s5 = sshll.u32 %s3340_s24, 7  ;;  %s468_s19 = scalar_lea.vmem [#allocation2], %s2306_s14 }
 0x12d   : > { %s4015_s2 = scalar_select %p3733_p11, 1, 0 }
 0x12e   : > { %s3741_s15 = scalar_lea.hbm %s3977_s0, %s2307_s5  ;;  %s475_s3 = sshll.u32 %s468_s19, 4  ;;  %s3747_s3 = int_to_ptr.vmem [resolvable:$true] %s475_s3 }
 0x12f   : > { %p3743_p12 = pnand %p2703_p10, %p50_p2  ;;  %s465_s12 = scalar_lea.sflag [#allocation3], %s464_s18 }
 0x130   : > { %s3220_s25 = scalar_lea.hbm %s3741_s15, 128  ;;  %s3225_s14 = scalar_lea.hbm %s3977_s0, 256 }
 0x131   : > { %p3221_p4 = scmp.ne.s32.totalorder %s3741_s15, %s3220_s25  ;;  %p3222_p8 = pneg %p3743_p12 }
 0x132   : > { %p3226_p1 = scmp.lt.u32.totalorder %s3741_s15, %s3977_s0  ;;  %p3227_p3 = scmp.lt.u32.totalorder %s3225_s14, %s3220_s25 }
 0x133   : > { %p3223_p13 = pnand %p3222_p8, %p3221_p4  ;;  %p3229_p5 = scmp.lt.u32.totalorder %s3220_s25, %s3741_s15 }
 0x134   : > { %p3228_p2 = por %p3227_p3, %p3226_p1 }
 0x135   : > { %p3224_p0 = pneg %p3223_p13 }
 0x136   : > { %p3230_p9 = por %p3229_p5, %p3228_p2 }
 0x138   : > { %p3231_p10 = pnand %p3230_p9, %p3224_p0 }
 0x13a   : > { %3234 = shalt.err (!%p3231_p10)
}
 0x13b   : > { %s3235_s18 = scalar_lea.vmem %s3747_s3, 128  ;;  %s3359_s1 = smov [#allocation2]  }
 0x13c   : > { %p3236_p4 = scmp.ne.s32.totalorder %s3747_s3, %s3235_s18  ;;  %s3240_s19 = sshll.u32 %s3359_s1, 4  ;;  %s3241_s19 = int_to_ptr.vmem [resolvable:$false] %s3240_s19 }
 0x13d   : > { %s3242_s26 = scalar_lea.vmem %s3241_s19, 256  ;;  %p3243_p6 = scmp.lt.s32.totalorder %s3747_s3, %s3241_s19 }
 0x13e   : > { %p3238_p13 = pnand %p3236_p4, %p3222_p8  ;;  %p3244_p1 = scmp.lt.s32.totalorder %s3242_s26, %s3235_s18 }
 0x140   : > { %p3239_p11 = pneg %p3238_p13  ;;  %p3245_p3 = por %p3244_p1, %p3243_p6 }
 0x142   : > { %p3246_p2 = pnand %p3245_p3, %p3239_p11 }
 0x144   : > { %3249 = shalt.err (!%p3246_p2)
}
 0x145   : > { %2687 = dma.hbm_to_vmem [thread:$0]  (!%p3743_p12), %s3741_s15, 128, %s3747_s3, %s465_s12  }
 0x146   : > { %s4017_s25 = sld [smem:[#allocation31_spill]] }
 0x14c   : > { %p4018_p0 = scmp.ne.s32.totalorder %s4017_s25, 0 }
 0x14d   : > { %s3777_s16 = sand.u32 (!%p4018_p0), 1, %s3332_s22  }
 0x14e   : > { %484 = sbr.rel (%p4018_p0) target bundleno = 3295 (0xcdf), region = 68  ;;  %s2309_s14 = sshll.u32 (!%p4018_p0), %s3777_s16, 3 }
 0x14f   : > { %s487_s5 = scalar_lea.sflag (!%p4018_p0), [#allocation3], %s3777_s16  ;;  %s490_s30 = scalar_lea.vmem (!%p4018_p0), [#allocation2], %s2309_s14 }
 0x155   : > { %3295 = dma.done.wait (%p3723_p7), %s487_s5, 128  }
 0x156   : > { %3297 = vsyncadd (%p3723_p7), %s487_s5, 4294967168  ;;  %p4019_p6 = scmp.eq.s32.totalorder %s3454_s27, 0 }
 0x158   : > { %3299 = dma.done.wait (%p4019_p6), [#allocation6], 32   ;;  %p4020_p11 = pmov %p4019_p6 }
 0x159   : > { %p4021_p12 = pmov %p4019_p6 }
 0x15a   : > { %3301 = vsyncadd (%p4020_p11), [#allocation6], 4294967264 }
 0x15b   : > { %3303 = dma.done.wait (%p4021_p12), [#allocation9], 4096   ;;  %p4022_p8 = pmov %p4019_p6 }
 0x15c   : > { %p4023_p5 = pmov %p4019_p6 }
 0x15d   : > { %3305 = vsyncadd (%p4022_p8), [#allocation9], 4294963200 }
 0x15e   : > { %3307 = dma.done.wait (%p4023_p5), [#allocation12], 32   ;;  %p4024_p9 = pmov %p4023_p5 }
 0x15f   : > { %p4025_p7 = pmov %p4023_p5 }
 0x160   : > { %3309 = vsyncadd (%p4024_p9), [#allocation12], 4294967264 }
 0x161   : > { %3311 = dma.done.wait (%p4025_p7), [#allocation15], 4112   ;;  %p4026_p10 = pmov %p4023_p5 }
 0x162   : > { %p4027_p4 = pmov %p4023_p5 }
 0x163   : > { %3313 = vsyncadd (%p4026_p10), [#allocation15], 4294963184 }
 0x164   : > { %3315 = dma.done.wait (%p4027_p4), [#allocation18], 4160   ;;  %p4028_p13 = pmov %p4027_p4 }
 0x165   : > { %p4029_p1 = pmov %p4027_p4 }
 0x166   : > { %3317 = vsyncadd (%p4028_p13), [#allocation18], 4294963136 }
 0x167   : > { %3319 = dma.done.wait (%p4029_p1), [#allocation21], 16   ;;  %p4030_p3 = pmov %p4029_p1 }
 0x168   : > { %v3811_v0 = vld [vmem:[%s490_s30] sm:$0xff]  ;;  %v3360_v3 = vmov 0.0   ;;  %v2776_v5 = vld [vmem:[#allocation8 + $0x1c] ss:$12 sps:$4 sm:$0xff]   ;;  %v3361_v25 = vmov 0   ;;  %vm3362_vm0 = vmmov 0   ;;  %v850_v54 = vlaneseq }
 0x169   : > { %3321 = vsyncadd (%p4030_p3), [#allocation21], 4294967280  ;;  %579 = vadd.xlane.f32.xlu0 %v3811_v0  ;;  %v2772_v1 = vld [vmem:[#allocation8 + $0x4] ss:$12 sps:$4 sm:$0xff]   ;;  %v2774_v2 = vld [vmem:[#allocation8] ss:$12 sps:$4 sm:$0xff]   ;;  %2514 = vmatprep.subr.bf16.mxu1 %v3360_v3 }
 0x16a   : > { %v2775_v4 = vld [vmem:[#allocation8 + $0x8] ss:$12 sps:$4 sm:$0xff]   ;;  %v2778_v6 = vld [vmem:[#allocation8 + $0x18] ss:$12 sps:$4 sm:$0xff]   ;;  %766 = vmatprep.subr.bf16.mxu0 %v2772_v1  ;;  %v2779_v7 = vld [vmem:[#allocation8 + $0x20] ss:$12 sps:$4 sm:$0xff]   ;;  %798 = vmatprep.mubr.bf16.mxu0 %v3361_v25 }
 0x16b   : > { %v2780_v8 = vld [vmem:[#allocation8 + $0x34] ss:$12 sps:$4 sm:$0xff]   ;;  %767 = vmatpush1.bf16.msra.mxu0 %v2774_v2  ;;  %2515 = vmatpush3.bf16.msra.mxu1 %v2775_v4  ;;  %v2782_v13 = vld [vmem:[#allocation8 + $0x30] ss:$12 sps:$4 sm:$0xff]   ;;  %v2783_v14 = vld [vmem:[#allocation8 + $0x38] ss:$12 sps:$4 sm:$0xff]  }
 0x16c   : > { %768 = vmatprep.subr.bf16.mxu0 %v2776_v5  ;;  %2516 = vmatprep.subr.bf16.mxu1 %v3360_v3  ;;  %v2784_v15 = vld [vmem:[#allocation8 + $0x4c] ss:$12 sps:$4 sm:$0xff]   ;;  %v2786_v16 = vld [vmem:[#allocation8 + $0x48] ss:$12 sps:$4 sm:$0xff]   ;;  %v2787_v17 = vld [vmem:[#allocation8 + $0x50] ss:$12 sps:$4 sm:$0xff]  }
 0x16d   : > { %v2788_v18 = vld [vmem:[#allocation8 + $0x64] ss:$12 sps:$4 sm:$0xff]   ;;  %v2790_v19 = vld [vmem:[#allocation8 + $0x60] ss:$12 sps:$4 sm:$0xff]   ;;  %v2791_v20 = vld [vmem:[#allocation8 + $0x68] ss:$12 sps:$4 sm:$0xff]   ;;  %2530 = vmatprep.mubr.msk.bf16.mxu1 %vm3362_vm0, %v3360_v3 }
 0x16e   : > { %v2792_v21 = vld [vmem:[#allocation8 + $0x7c] ss:$12 sps:$4 sm:$0xff]   ;;  %v2794_v22 = vld [vmem:[#allocation8 + $0x78] ss:$12 sps:$4 sm:$0xff]   ;;  %v2795_v23 = vld [vmem:[#allocation8 + $0x80] ss:$12 sps:$4 sm:$0xff]  }
 0x16f   : > { %769 = vmatpush1.bf16.msra.mxu0 %v2778_v6  ;;  %2517 = vmatpush3.bf16.msra.mxu1 %v2779_v7  ;;  %v2796_v24 = vld [vmem:[#allocation8 + $0x94] ss:$12 sps:$4 sm:$0xff]   ;;  %v2798_v26 = vld [vmem:[#allocation8 + $0x90] ss:$12 sps:$4 sm:$0xff]   ;;  %v2799_v27 = vld [vmem:[#allocation8 + $0x98] ss:$12 sps:$4 sm:$0xff]  }
 0x170   : > { %770 = vmatprep.subr.bf16.mxu0 %v2780_v8  ;;  %2518 = vmatprep.subr.bf16.mxu1 %v3360_v3  ;;  %v2800_v28 = vld [vmem:[#allocation8 + $0xac] ss:$12 sps:$4 sm:$0xff]   ;;  %v2802_v29 = vld [vmem:[#allocation8 + $0xa8] ss:$12 sps:$4 sm:$0xff]   ;;  %v2803_v30 = vld [vmem:[#allocation8 + $0xb0] ss:$12 sps:$4 sm:$0xff]  }
 0x171   : > { %v2322_v35 = vld [vmem:[#allocation5] ss:$0 sm:$0xff]  ;;  %v2323_v37 = vld [vmem:[#allocation7] ss:$0 sm:$0xff]  ;;  %vm856_vm1 = vcmask 261120   ;;  %s3363_s28 = smov 96  }
 0x172   : > { %s3364_s15 = smov 32   ;;  %vm919_vm2 = vcmask 1043456   ;;  %v3844_v55 = vshrl.u32 %v850_v54, 7  ;;  %v853_v56 = vand.u32 127, %v850_v54  ;;  %v3365_v57 = vmov -1e+30  }
 0x173   : > { %771 = vmatpush1.bf16.msra.mxu0 %v2782_v13  ;;  %2519 = vmatpush3.bf16.msra.mxu1 %v2783_v14  ;;  %vm903_vm4 = vcmask 64512   ;;  %s3366_s3 = smov 64   ;;  %vm1309_vm5 = vcmask 523264   ;;  %vm1311_vm6 = vcmask 785408   ;;  %s2433_s29 = sshll.u32 %s3454_s27, 7 }
 0x174   : > { %2520 = vmatprep.subr.bf16.mxu1 %v3360_v3  ;;  %772 = vmatprep.subr.bf16.mxu0 %v2784_v15  ;;  %vm854_vm3 = vcmp.ge.s32.totalorder %v3844_v55, %v853_v56  ;;  %s574_s12 = scalar_lea.vmem [#allocation22], %s2309_s14  ;;  %s4031_s26 = sld [smem:[#allocation36_spill]] }
 0x175   : > { %v3847_v58 = vsel %vm854_vm3, 0.0, %v3365_v57  ;;  %s2117_s18 = sshll.u32 %s574_s12, 4  ;;  %s2104_s5 = scalar_lea.sflag [#allocation4], %s3777_s16  ;;  %s3935_s18 = int_to_ptr.vmem [resolvable:$true] %s2117_s18 }
 0x176   : > { %s3250_s30 = scalar_lea.vmem %s3935_s18, 128  ;;  %p4032_p0 = scmp.ne.s32.totalorder %s4014_s17, 0 }
 0x177   : > { %773 = vmatpush1.bf16.msra.mxu0 %v2786_v16  ;;  %2521 = vmatpush3.bf16.msra.mxu1 %v2787_v17  ;;  %p3251_p2 = scmp.ne.s32.totalorder %s3935_s18, %s3250_s30  ;;  %s3367_s27 = smov [#allocation22]  }
 0x178   : > { %2522 = vmatprep.subr.bf16.mxu1 %v3360_v3  ;;  %774 = vmatprep.subr.bf16.mxu0 %v2788_v18  ;;  %s3254_s14 = sshll.u32 %s3367_s27, 4  ;;  %s3255_s14 = int_to_ptr.vmem [resolvable:$false] %s3254_s14 }
 0x179   : > { %p3252_p6 = pnand %p3251_p2, %p4032_p0  ;;  %p3257_p12 = scmp.lt.s32.totalorder %s3935_s18, %s3255_s14 }
 0x17a   : > { %s3933_s25 = scalar_lea.hbm %s4031_s26, %s2433_s29 }
 0x17b   : > { %775 = vmatpush1.bf16.msra.mxu0 %v2790_v19  ;;  %2523 = vmatpush3.bf16.msra.mxu1 %v2791_v20  ;;  %p3253_p11 = pneg %p3252_p6 }
 0x17c   : > { %776 = vmatprep.subr.bf16.mxu0 %v2792_v21  ;;  %2524 = vmatprep.subr.bf16.mxu1 %v3360_v3 }
 0x17f   : > { %777 = vmatpush1.bf16.msra.mxu0 %v2794_v22  ;;  %2525 = vmatpush3.bf16.msra.mxu1 %v2795_v23 }
 0x180   : > { %778 = vmatprep.subr.bf16.mxu0 %v2796_v24  ;;  %2526 = vmatprep.subr.bf16.mxu1 %v3360_v3 }
 0x183   : > { %779 = vmatpush1.bf16.msra.mxu0 %v2798_v26  ;;  %2527 = vmatpush3.bf16.msra.mxu1 %v2799_v27 }
 0x184   : > { %780 = vmatprep.subr.bf16.mxu0 %v2800_v28  ;;  %2528 = vmatprep.subr.bf16.mxu1 %v3360_v3 }
 0x187   : > { %781 = vmatpush1.bf16.msra.mxu0 %v2802_v29  ;;  %2529 = vmatpush3.bf16.msra.mxu1 %v2803_v30 }
 0x188   : > { %2534 = vmatprep.subr.bf16.mxu1 %v3360_v3  ;;  %2558 = vmatprep.subr.bf16.mxu0 %v3360_v3 }
 0x1f6   : > { %v580_v9 = vpop.xlane.xlu0 %579 }
 0x1f7   : > { %v582_v10 = vmul.f32 0.0078125, %v580_v9 }
 0x1f9   : > { %v583_v11 = vsub.f32 %v3811_v0, %v582_v10 }
 0x1fb   : > { %v584_v12 = vmul.f32 %v583_v11, %v583_v11 }
 0x1fd   : > { %585 = vadd.xlane.f32.xlu0 %v584_v12 }
 0x28a   : > { %v586_v31 = vpop.xlane.xlu0 %585 }
 0x28b   : > { %v587_v32 = vmul.f32 0.0078125, %v586_v31 }
 0x28d   : > { %v588_v33 = vadd.f32 1e-05, %v587_v32 }
 0x28f   : > { %2892 = vrsqrt.f32 %v588_v33 }
 0x299   : > { %v2893_v34 = vpop.eup %2892 }
 0x29a   : > { %v590_v36 = vmul.f32 %v2893_v34, %v583_v11 }
 0x29c   : > { %v597_v38 = vmul.f32 %v2322_v35, %v590_v36 }
 0x29e   : > { %v604_v39 = vadd.f32 %v2323_v37, %v597_v38 }
 0x2a0   : > { %v605_v40 = vpack.c.bf16 %v604_v39, %v604_v39 }
 0x2a2   : > { %799 = vmatmul.mubr.bf16.vlgmr.msra.gmra.mrb[0].mxu0 %v605_v40  ;;  %2531 = vmatmul.mubr.bf16.vlgmr.msra.gmra.mrb[0].mxu1 %v605_v40 }
 0x2a3   : > { %2536 = vmatprep.mubr.msk.bf16.mxu1 %vm3362_vm0, %v3360_v3  ;;  %2560 = vmatprep.mubr.msk.bf16.mxu0 %vm3362_vm0, %v3360_v3 }
 0x375   : > { %v800_v41 = vpop.f32.mrb[0].mxu0  ;;  %v841_v42 = vpop.f32.mrb[0].mxu1 }
 0x376   : > { %v802_v43 = vpop.f32.mrb[1].mxu0  ;;  %v2532_v44 = vpop.f32.mrb[1].mxu1  ;;  %v3835_v51 = vpack.c.bf16 %v841_v42, %v841_v42  ;;  %v847_v52 = vpack.c.bf16 %v800_v41, %v800_v41 }
 0x377   : > { %v848_v45 = vpack.c.bf16 %v802_v43, %v802_v43  ;;  %v804_v46 = vpop.f32.mrb[2].mxu0  ;;  %v844_v47 = vpop.f32.mrb[2].mxu1 }
 0x378   : > { %v805_v48 = vpop.f32.mrb[3].mxu0  ;;  %v2533_v49 = vpop.f32.mrb[3].mxu1  ;;  %v921_v53 = vsel %vm919_vm2, %v3835_v51, 0 }
 0x379   : > { %967 = vrot.lane.b32.xlu0 %v848_v45, %s3363_s28  ;;  %v861_v50 = vsel %vm856_vm1, %v848_v45, 0 }
 0x37a   : > { %2535 = vmatpush3.bf16.xpose.msra.mxu1 %v861_v50 }
 0x37b   : > { %2540 = vmatprep.subr.bf16.mxu1 %v3360_v3 }
 0x37d   : > { %1188 = vrot.lane.b32.xlu0 %v848_v45, %s3364_s15 }
 0x381   : > { %2537 = vmatmul.mubr.msk.bf16.vlgmr.msra.gmra.mrb[4].mxu1 %vm856_vm1, %v847_v52 }
 0x382   : > { %2541 = vmatpush3.bf16.msra.mxu1 %v921_v53  ;;  %2542 = vmatprep.mubr.msk.bf16.mxu1 %vm3362_vm0, %v3360_v3 }
 0x383   : > { %2546 = vmatprep.subr.bf16.mxu1 %v3360_v3 }
 0x3eb   : > { %v968_v10 = vpop.permute.xlu0 %967 }
 0x3ec   : > { %v973_v17 = vsel %vm856_vm1, %v968_v10, 0 }
 0x3ef   : > { %v1189_v15 = vpop.permute.xlu0 %1188 }
 0x3f0   : > { %v1194_v19 = vsel %vm856_vm1, %v1189_v15, 0 }
 0x454   : > { %v897_v59 = vpop.f32.mrb[4].mxu1 }
 0x455   : > { %v898_v60 = vadd.f32 %v897_v59, %v3847_v58  ;;  %v2538_v61 = vpop.f32.mrb[5].mxu1 }
 0x456   : > { %v900_v62 = vpop.f32.mrb[6].mxu1 }
 0x457   : > { %v2539_v63 = vpop.f32.mrb[7].mxu1  ;;  %v904_v1 = vsel %vm903_vm4, %v898_v60, -inf }
 0x458   : > { %905 = vmax.xlane.f32.xlu1 %v904_v1 }
 0x4e5   : > { %v906_v2 = vpop.xlane.xlu1 %905 }
 0x4e6   : > { %v907_v4 = vsub.f32 %v898_v60, %v906_v2 }
 0x4e8   : > { %v908_v5 = vmul.f32 1.442695, %v907_v4 }
 0x4ea   : > { %2894 = vpow2.f32 %v908_v5 }
 0x4f4   : > { %v2895_v6 = vpop.eup %2894 }
 0x4f5   : > { %v910_v7 = vsel %vm903_vm4, %v2895_v6, 0.0 }
 0x4f6   : > { %911 = vadd.xlane.f32.xlu1 %v910_v7 }
 0x507   : > { %964 = vrot.lane.b32.xlu1 %v847_v52, %s3363_s28 }
 0x50b   : > { %1078 = vrot.lane.b32.xlu1 %v848_v45, %s3366_s3 }
 0x50f   : > { %1076 = vrot.lane.b32.xlu1 %v847_v52, %s3366_s3 }
 0x513   : > { %1186 = vrot.lane.b32.xlu1 %v847_v52, %s3364_s15 }
 0x583   : > { %v912_v8 = vpop.xlane.xlu1 %911 }
 0x584   : > { %2896 = vrcp.f32 %v912_v8 }
 0x587   : > { %v965_v9 = vpop.permute.xlu1 %964 }
 0x58b   : > { %v1079_v11 = vpop.permute.xlu1 %1078 }
 0x58c   : > { %v1084_v12 = vsel %vm856_vm1, %v1079_v11, 0 }
 0x58d   : > { %2559 = vmatpush3.bf16.xpose.msra.mxu0 %v1084_v12 }
 0x58e   : > { %v2897_v13 = vpop.eup %2896  ;;  %2570 = vmatprep.subr.bf16.mxu0 %v3360_v3 }
 0x58f   : > { %v914_v14 = vmul.f32 %v2897_v13, %v2895_v6  ;;  %v1077_v18 = vpop.permute.xlu1 %1076 }
 0x591   : > { %v915_v16 = vpack.c.bf16 %v914_v14, %v914_v14 }
 0x593   : > { %2543 = vmatmul.mubr.msk.bf16.vlgmr.msra.gmra.mrb[8].mxu1 %vm903_vm4, %v915_v16  ;;  %v1187_v20 = vpop.permute.xlu1 %1186  ;;  %v2804_v16 = vld [vmem:[#allocation10] sm:$0xff]  }
 0x594   : > { %2547 = vmatpush3.bf16.xpose.msra.mxu1 %v973_v17  ;;  %2561 = vmatmul.mubr.msk.bf16.vlgmr.msra.gmra.mrb[4].mxu0 %vm856_vm1, %v1077_v18  ;;  %v2805_v17 = vld [vmem:[#allocation10 + $0x8] sm:$0xff]   ;;  %v2806_v18 = vld [vmem:[#allocation10 + $0x10] sm:$0xff]  }
 0x595   : > { %2571 = vmatpush3.bf16.xpose.msra.mxu0 %v1194_v19  ;;  %2548 = vmatprep.mubr.msk.bf16.mxu1 %vm3362_vm0, %v3360_v3  ;;  %v2807_v19 = vld [vmem:[#allocation10 + $0x18] sm:$0xff]  }
 0x596   : > { %2572 = vmatprep.mubr.msk.bf16.mxu0 %vm3362_vm0, %v3360_v3  ;;  %2552 = vmatprep.subr.bf16.mxu1 %v3360_v3 }
 0x597   : > { %2582 = vmatprep.subr.bf16.mxu0 %v3360_v3 }
 0x59b   : > { %2549 = vmatmul.mubr.msk.bf16.vlgmr.msra.gmra.mrb[12].mxu1 %vm856_vm1, %v965_v9 }
 0x59c   : > { %2573 = vmatmul.mubr.msk.bf16.vlgmr.msra.gmra.mrb[8].mxu0 %vm856_vm1, %v1187_v20  ;;  %2554 = vmatprep.mubr.msk.bf16.mxu1 %vm3362_vm0, %v3360_v3  ;;  %v2808_v20 = vld [vmem:[#allocation10 + $0x20] sm:$0xff]  }
 0x59d   : > { %2598 = vmatprep.mubr.msk.bf16.mxu0 %vm3362_vm0, %v3360_v3  ;;  %2583 = vmatpush3.bf16.msra.mxu0 %v2804_v16  ;;  %v2853_v16 = vld [vmem:[#allocation16 + $0xcc] ss:$16 sps:$4 sm:$0xff]  }
 0x59e   : > { %2584 = vmatprep.subr.bf16.mxu0 %v3360_v3 }
 0x5a1   : > { %2585 = vmatpush3.bf16.msra.mxu0 %v2805_v17  ;;  %v2848_v17 = vld [vmem:[#allocation16 + $0xc0] ss:$16 sps:$4 sm:$0xff]  }
 0x5a2   : > { %2586 = vmatprep.subr.bf16.mxu0 %v3360_v3 }
 0x5a5   : > { %2587 = vmatpush3.bf16.msra.mxu0 %v2806_v18  ;;  %v2851_v18 = vld [vmem:[#allocation16 + $0xc8] ss:$16 sps:$4 sm:$0xff]  }
 0x5a6   : > { %2588 = vmatprep.subr.bf16.mxu0 %v3360_v3 }
 0x5a9   : > { %2589 = vmatpush3.bf16.msra.mxu0 %v2807_v19  ;;  %v2856_v19 = vld [vmem:[#allocation16 + $0xe4] ss:$16 sps:$4 sm:$0xff]  }
 0x5aa   : > { %2590 = vmatprep.subr.bf16.mxu0 %v3360_v3 }
 0x5ad   : > { %2591 = vmatpush3.bf16.msra.mxu0 %v2808_v20  ;;  %v2859_v20 = vld [vmem:[#allocation16 + $0xec] ss:$16 sps:$4 sm:$0xff]  }
 0x5ae   : > { %2592 = vmatprep.subr.bf16.mxu0 %v3360_v3 }
 0x666   : > { %v3874_v21 = vpop.f32.mrb[8].mxu1 }
 0x667   : > { %v2544_v22 = vpop.f32.mrb[9].mxu1  ;;  %v1120_v23 = vpop.f32.mrb[4].mxu0 }
 0x668   : > { %v1121_v24 = vadd.f32 %v1120_v23, %v3847_v58  ;;  %v960_v26 = vpop.f32.mrb[10].mxu1  ;;  %v2562_v27 = vpop.f32.mrb[5].mxu0  ;;  %v2809_v22 = vld [vmem:[#allocation10 + $0x28] sm:$0xff]   ;;  %v2810_v23 = vld [vmem:[#allocation10 + $0x30] sm:$0xff]  }
 0x669   : > { %v2545_v28 = vpop.f32.mrb[11].mxu1  ;;  %v1123_v29 = vpop.f32.mrb[6].mxu0  ;;  %2593 = vmatpush3.bf16.msra.mxu0 %v2809_v22  ;;  %v2854_v22 = vld [vmem:[#allocation16 + $0xe0] ss:$16 sps:$4 sm:$0xff]  }
 0x66a   : > { %v2563_v30 = vpop.f32.mrb[7].mxu0  ;;  %v1126_v31 = vsel %vm903_vm4, %v1121_v24, -inf  ;;  %2594 = vmatprep.subr.bf16.mxu0 %v3360_v3  ;;  %v2811_v29 = vld [vmem:[#allocation10 + $0x38] sm:$0xff]  }
 0x66b   : > { %1127 = vmax.xlane.f32.xlu1 %v1126_v31 }
 0x66d   : > { %2595 = vmatpush3.bf16.msra.mxu0 %v2810_v23  ;;  %v2857_v23 = vld [vmem:[#allocation16 + $0xe8] ss:$16 sps:$4 sm:$0xff]  }
 0x66e   : > { %v1009_v32 = vpop.f32.mrb[12].mxu1  ;;  %2596 = vmatprep.subr.bf16.mxu0 %v3360_v3 }
 0x66f   : > { %v1010_v33 = vadd.f32 %v1009_v32, %v3847_v58  ;;  %v2550_v34 = vpop.f32.mrb[13].mxu1  ;;  %v1230_v35 = vpop.f32.mrb[8].mxu0 }
 0x670   : > { %v1012_v36 = vpop.f32.mrb[14].mxu1  ;;  %v2574_v37 = vpop.f32.mrb[9].mxu0  ;;  %v1231_v38 = vadd.f32 %v1230_v35, %v3847_v58 }
 0x671   : > { %v2551_v39 = vpop.f32.mrb[15].mxu1  ;;  %v1233_v40 = vpop.f32.mrb[10].mxu0  ;;  %v1015_v41 = vsel %vm903_vm4, %v1010_v33, -inf  ;;  %2597 = vmatpush3.bf16.msra.mxu0 %v2811_v29 }
 0x672   : > { %1016 = vmax.xlane.f32.xlu0 %v1015_v41  ;;  %v2575_v42 = vpop.f32.mrb[11].mxu0  ;;  %v1236_v43 = vsel %vm903_vm4, %v1231_v38, -inf }
 0x676   : > { %1237 = vmax.xlane.f32.xlu0 %v1236_v43 }
 0x6f8   : > { %v1128_v44 = vpop.xlane.xlu1 %1127 }
 0x6f9   : > { %v1129_v45 = vsub.f32 %v1121_v24, %v1128_v44  ;;  %v2356_v44 = vld [vmem:[#allocation11] ss:$0 sm:$0xff] }
 0x6fb   : > { %v1130_v46 = vmul.f32 1.442695, %v1129_v45 }
 0x6fd   : > { %2898 = vpow2.f32 %v1130_v46 }
 0x6ff   : > { %v1017_v47 = vpop.xlane.xlu0 %1016 }
 0x700   : > { %v1018_v48 = vsub.f32 %v1010_v33, %v1017_v47 }
 0x702   : > { %v1019_v49 = vmul.f32 1.442695, %v1018_v48 }
 0x703   : > { %v1238_v50 = vpop.xlane.xlu0 %1237 }
 0x704   : > { %2900 = vpow2.f32 %v1019_v49  ;;  %v1239_v52 = vsub.f32 %v1231_v38, %v1238_v50 }
 0x706   : > { %v1240_v53 = vmul.f32 1.442695, %v1239_v52  ;;  %v2812_v52 = vld [vmem:[#allocation16] ss:$16 sps:$4 sm:$0xff]  }
 0x707   : > { %v2899_v54 = vpop.eup %2898 }
 0x708   : > { %2902 = vpow2.f32 %v1240_v53  ;;  %v1132_v56 = vsel %vm903_vm4, %v2899_v54, 0.0  ;;  %v2815_v53 = vld [vmem:[#allocation16 + $0x8] ss:$16 sps:$4 sm:$0xff]  }
 0x709   : > { %1133 = vadd.xlane.f32.xlu0 %v1132_v56  ;;  %v2820_v56 = vld [vmem:[#allocation16 + $0x24] ss:$16 sps:$4 sm:$0xff]  }
 0x70e   : > { %v2901_v57 = vpop.eup %2900 }
 0x70f   : > { %v1021_v58 = vsel %vm903_vm4, %v2901_v57, 0.0 }
 0x710   : > { %1022 = vadd.xlane.f32.xlu0 %v1021_v58  ;;  %v2821_v58 = vld [vmem:[#allocation16 + $0x28] ss:$16 sps:$4 sm:$0xff]  }
 0x712   : > { %v2903_v59 = vpop.eup %2902 }
 0x713   : > { %v1242_v60 = vsel %vm903_vm4, %v2903_v59, 0.0 }
 0x714   : > { %1243 = vadd.xlane.f32.xlu1 %v1242_v60  ;;  %v2824_v60 = vld [vmem:[#allocation16 + $0x40] ss:$16 sps:$4 sm:$0xff]  }
 0x725   : > { %1138 = vrot.lane.b32.xlu1 %v3835_v51, %s3366_s3 }
 0x726   : > { %1028 = vrot.lane.b32.xlu0 %v3835_v51, %s3363_s28 }
 0x729   : > { %1248 = vrot.lane.b32.xlu1 %v3835_v51, %s3364_s15 }
 0x796   : > { %v1134_v61 = vpop.xlane.xlu0 %1133 }
 0x79d   : > { %v1023_v62 = vpop.xlane.xlu0 %1022 }
 0x79e   : > { %2904 = vrcp.f32 %v1023_v62 }
 0x79f   : > { %2906 = vrcp.f32 %v1134_v61  ;;  %v2827_v61 = vld [vmem:[#allocation16 + $0x48] ss:$16 sps:$4 sm:$0xff]  }
 0x7a1   : > { %v1029_v63 = vpop.permute.xlu0 %1028  ;;  %v1244_v2 = vpop.xlane.xlu1 %1243 }
 0x7a2   : > { %v1034_v1 = vsel %vm919_vm2, %v1029_v63, 0  ;;  %2908 = vrcp.f32 %v1244_v2 }
 0x7a3   : > { %2553 = vmatpush3.bf16.msra.mxu1 %v1034_v1 }
 0x7a4   : > { %2564 = vmatprep.subr.bf16.mxu1 %v3360_v3 }
 0x7a5   : > { %v1139_v6 = vpop.permute.xlu1 %1138 }
 0x7a6   : > { %v1144_v9 = vsel %vm919_vm2, %v1139_v6, 0  ;;  %v2830_v6 = vld [vmem:[#allocation16 + $0x60] ss:$16 sps:$4 sm:$0xff]  }
 0x7a8   : > { %v2905_v4 = vpop.eup %2904 }
 0x7a9   : > { %v1025_v5 = vmul.f32 %v2905_v4, %v2901_v57  ;;  %v2907_v8 = vpop.eup %2906  ;;  %v1249_v10 = vpop.permute.xlu1 %1248  ;;  %v2823_v57 = vld [vmem:[#allocation16 + $0x2c] ss:$16 sps:$4 sm:$0xff]   ;;  %v2832_v4 = vld [vmem:[#allocation16 + $0x64] ss:$16 sps:$4 sm:$0xff]  }
 0x7aa   : > { %v1136_v51 = vmul.f32 %v2907_v8, %v2899_v54  ;;  %v1254_v13 = vsel %vm919_vm2, %v1249_v10, 0  ;;  %v2817_v54 = vld [vmem:[#allocation16 + $0xc] ss:$16 sps:$4 sm:$0xff]   ;;  %v2838_v8 = vld [vmem:[#allocation16 + $0x84] ss:$16 sps:$4 sm:$0xff]  }
 0x7ab   : > { %v1026_v7 = vpack.c.bf16 %v1025_v5, %v1025_v5  ;;  %1709 = vmatprep.subr.bf16.mxu0 %v2817_v54  ;;  %v2835_v5 = vld [vmem:[#allocation16 + $0x6c] ss:$16 sps:$4 sm:$0xff]   ;;  %v2839_v10 = vld [vmem:[#allocation16 + $0x88] ss:$16 sps:$4 sm:$0xff]  }
 0x7ac   : > { %v1137_v11 = vpack.c.bf16 %v1136_v51, %v1136_v51  ;;  %v2909_v12 = vpop.eup %2908  ;;  %v2836_v51 = vld [vmem:[#allocation16 + $0x80] ss:$16 sps:$4 sm:$0xff]   ;;  %v2879_v54 = vld [vmem:[#allocation19 + $0xa0] sm:$0xff]  }
 0x7ad   : > { %2555 = vmatmul.mubr.msk.bf16.vlgmr.msra.gmra.mrb[16].mxu1 %vm903_vm4, %v1026_v7  ;;  %v1246_v14 = vmul.f32 %v2909_v12, %v2903_v59  ;;  %v2826_v59 = vld [vmem:[#allocation16 + $0x44] ss:$16 sps:$4 sm:$0xff]   ;;  %v2833_v7 = vld [vmem:[#allocation16 + $0x68] ss:$16 sps:$4 sm:$0xff]   ;;  %v2847_v12 = vld [vmem:[#allocation16 + $0xac] ss:$16 sps:$4 sm:$0xff]  }
 0x7ae   : > { %2565 = vmatpush3.bf16.msra.mxu1 %v1144_v9  ;;  %2566 = vmatprep.mubr.msk.bf16.mxu1 %vm3362_vm0, %v3360_v3  ;;  %v2841_v9 = vld [vmem:[#allocation16 + $0x8c] ss:$16 sps:$4 sm:$0xff]  }
 0x7af   : > { %2576 = vmatprep.subr.bf16.mxu1 %v3360_v3  ;;  %v1247_v15 = vpack.c.bf16 %v1246_v14, %v1246_v14  ;;  %v2845_v14 = vld [vmem:[#allocation16 + $0xa8] ss:$16 sps:$4 sm:$0xff]  }
 0x7b5   : > { %2567 = vmatmul.mubr.msk.bf16.vlgmr.msra.gmra.mrb[20].mxu1 %vm903_vm4, %v1137_v11  ;;  %v2844_v11 = vld [vmem:[#allocation16 + $0xa4] ss:$16 sps:$4 sm:$0xff]  }
 0x7b6   : > { %2577 = vmatpush3.bf16.msra.mxu1 %v1254_v13  ;;  %2578 = vmatprep.mubr.msk.bf16.mxu1 %vm3362_vm0, %v3360_v3  ;;  %v2842_v13 = vld [vmem:[#allocation16 + $0xa0] ss:$16 sps:$4 sm:$0xff]  }
 0x7bd   : > { %2579 = vmatmul.mubr.msk.bf16.vlgmr.msra.gmra.mrb[24].mxu1 %vm903_vm4, %v1247_v15  ;;  %v2850_v15 = vld [vmem:[#allocation16 + $0xc4] ss:$16 sps:$4 sm:$0xff]  }
 0x7be   : > { %1700 = vmatprep.mubr.bf16.mxu1 %v3361_v25 }
 0x880   : > { %v1070_v24 = vpop.f32.mrb[16].mxu1 }
 0x881   : > { %1297 = vrot.lane.b32.xlu1 %v1070_v24, %s3364_s15  ;;  %v2556_v26 = vpop.f32.mrb[17].mxu1  ;;  %v2860_v24 = vld [vmem:[#allocation19 + $0x40] sm:$0xff]  }
 0x882   : > { %v1073_v27 = vpop.f32.mrb[18].mxu1  ;;  %v2861_v26 = vld [vmem:[#allocation19 + $0xc0] sm:$0xff]  }
 0x883   : > { %v2557_v28 = vpop.f32.mrb[19].mxu1 }
 0x888   : > { %v1180_v30 = vpop.f32.mrb[20].mxu1 }
 0x889   : > { %1301 = vrot.lane.b32.xlu0 %v1180_v30, %s3366_s3  ;;  %v2568_v31 = vpop.f32.mrb[21].mxu1 }
 0x88a   : > { %v1183_v32 = vpop.f32.mrb[22].mxu1  ;;  %v2365_v31 = vld [vmem:[#allocation13] ss:$0 sm:$0xff] }
 0x88b   : > { %v2569_v33 = vpop.f32.mrb[23].mxu1 }
 0x88c   : > { %v2366_v33 = vld [vmem:[#allocation14] ss:$0 sm:$0xff] }
 0x890   : > { %v1290_v34 = vpop.f32.mrb[24].mxu1 }
 0x891   : > { %1305 = vrot.lane.b32.xlu1 %v1290_v34, %s3363_s28  ;;  %v2580_v35 = vpop.f32.mrb[25].mxu1  ;;  %s3256_s28 = scalar_lea.vmem %s3255_s14, 256 }
 0x892   : > { %v1293_v36 = vpop.f32.mrb[26].mxu1  ;;  %p3258_p8 = scmp.lt.s32.totalorder %s3256_s28, %s3250_s30 }
 0x893   : > { %v2581_v37 = vpop.f32.mrb[27].mxu1  ;;  %v2862_v36 = vld [vmem:[#allocation19] sm:$0xff]  }
 0x894   : > { %v2863_v37 = vld [vmem:[#allocation19 + $0x80] sm:$0xff]   ;;  %p3259_p5 = por %p3258_p8, %p3257_p12 }
 0x896   : > { %p3260_p9 = pnand %p3259_p5, %p3253_p11 }
 0x8f3   : > { %v1298_v38 = vpop.permute.xlu1 %1297 }
 0x8f4   : > { %v1308_v3 = vsel %vm856_vm1, %v3874_v21, %v1298_v38  ;;  %v2814_v21 = vld [vmem:[#allocation16 + $0x4] ss:$16 sps:$4 sm:$0xff]  }
 0x8f5   : > { %1668 = vmatprep.subr.bf16.mxu1 %v2814_v21  ;;  %v2877_v21 = vld [vmem:[#allocation19 + $0xe0] sm:$0xff]  }
 0x8f6   : > { %1669 = vmatpush1.bf16.msra.mxu1 %v2812_v52  ;;  %v2876_v52 = vld [vmem:[#allocation19 + $0x60] sm:$0xff]  }
 0x8f7   : > { %1670 = vmatprep.subr.bf16.mxu1 %v2820_v56  ;;  %v2880_v56 = vld [vmem:[#allocation19 + $0x68] sm:$0xff]  }
 0x8fb   : > { %v1302_v39 = vpop.permute.xlu0 %1301 }
 0x8fc   : > { %v1310_v40 = vsel %vm1309_vm5, %v1308_v3, %v1302_v39  ;;  %v2864_v39 = vld [vmem:[#allocation19 + $0x48] sm:$0xff]  }
 0x8fd   : > { %v2865_v3 = vld [vmem:[#allocation19 + $0xc8] sm:$0xff]  }
 0x903   : > { %v1306_v41 = vpop.permute.xlu1 %1305 }
 0x904   : > { %v1312_v42 = vsel %vm1311_vm6, %v1310_v40, %v1306_v41  ;;  %v2866_v40 = vld [vmem:[#allocation19 + $0x8] sm:$0xff]  }
 0x905   : > { %v1313_v43 = vpack.c.bf16 %v1312_v42, %v1312_v42  ;;  %v2867_v41 = vld [vmem:[#allocation19 + $0x88] sm:$0xff]   ;;  %v2868_v42 = vld [vmem:[#allocation19 + $0x50] sm:$0xff]  }
 0x907   : > { %2599 = vmatmul.mubr.bf16.vlgmr.msra.gmra.mrb[12].mxu0 %v1313_v43  ;;  %v2869_v43 = vld [vmem:[#allocation19 + $0xd0] sm:$0xff]  }
 0x908   : > { %1741 = vmatprep.mubr.bf16.mxu0 %v3361_v25  ;;  %v2818_v25 = vld [vmem:[#allocation16 + $0x20] ss:$16 sps:$4 sm:$0xff]   ;;  %1710 = vmatpush1.bf16.msra.mxu0 %v2815_v53  ;;  %v2878_v53 = vld [vmem:[#allocation19 + $0x20] sm:$0xff]  }
 0x909   : > { %1711 = vmatprep.subr.bf16.mxu0 %v2823_v57  ;;  %1671 = vmatpush1.bf16.msra.mxu1 %v2818_v25  ;;  %v2881_v57 = vld [vmem:[#allocation19 + $0xe8] sm:$0xff]  }
 0x90a   : > { %1672 = vmatprep.subr.bf16.mxu1 %v2826_v59  ;;  %v2882_v25 = vld [vmem:[#allocation19 + $0x28] sm:$0xff]   ;;  %v2884_v59 = vld [vmem:[#allocation19 + $0x70] sm:$0xff]  }
 0x90c   : > { %1712 = vmatpush1.bf16.msra.mxu0 %v2821_v58  ;;  %v2883_v58 = vld [vmem:[#allocation19 + $0xa8] sm:$0xff]  }
 0x90d   : > { %1673 = vmatpush1.bf16.msra.mxu1 %v2824_v60  ;;  %v2886_v60 = vld [vmem:[#allocation19 + $0x30] sm:$0xff]  }
 0x90e   : > { %1674 = vmatprep.subr.bf16.mxu1 %v2832_v4  ;;  %v1490_v4 = vsub.s32 0, %v3844_v55 }
 0x911   : > { %1675 = vmatpush1.bf16.msra.mxu1 %v2830_v6  ;;  %v1486_v6 = vld [vmem:[#allocation17] sm:$0xf] }
 0x912   : > { %1676 = vmatprep.subr.bf16.mxu1 %v2838_v8  ;;  %v1502_v8 = vsub.s32 3, %v3844_v55 }
 0x915   : > { %1677 = vmatpush1.bf16.msra.mxu1 %v2836_v51 }
 0x916   : > { %1678 = vmatprep.subr.bf16.mxu1 %v2844_v11  ;;  %v1503_v11 = vrot.slane %v1486_v6, %v1502_v8 }
 0x919   : > { %1679 = vmatpush1.bf16.msra.mxu1 %v2842_v13 }
 0x91a   : > { %1680 = vmatprep.subr.bf16.mxu1 %v2850_v15 }
 0x91d   : > { %1681 = vmatpush1.bf16.msra.mxu1 %v2848_v17 }
 0x91e   : > { %1682 = vmatprep.subr.bf16.mxu1 %v2856_v19 }
 0x921   : > { %1683 = vmatpush1.bf16.msra.mxu1 %v2854_v22 }
 0x922   : > { %2470 = vmatprep.subr.bf16.mxu1 %v2860_v24 }
 0x9da   : > { %v1419_v45 = vpop.f32.mrb[12].mxu0 }
 0x9db   : > { %v1420_v46 = vadd.f32 %v2356_v44, %v1419_v45  ;;  %v2600_v47 = vpop.f32.mrb[13].mxu0  ;;  %v2870_v44 = vld [vmem:[#allocation19 + $0x10] sm:$0xff]  }
 0x9dc   : > { %v1422_v48 = vpop.f32.mrb[14].mxu0  ;;  %v2871_v45 = vld [vmem:[#allocation19 + $0x90] sm:$0xff]   ;;  %v2873_v47 = vld [vmem:[#allocation19 + $0xd8] sm:$0xff]  }
 0x9dd   : > { %v3918_v49 = vadd.f32 %v1420_v46, %v3811_v0  ;;  %v2601_v50 = vpop.f32.mrb[15].mxu0  ;;  %v2829_v0 = vld [vmem:[#allocation16 + $0x4c] ss:$16 sps:$4 sm:$0xff]  }
 0x9de   : > { %1713 = vmatprep.subr.bf16.mxu0 %v2829_v0  ;;  %v2872_v46 = vld [vmem:[#allocation19 + $0x58] sm:$0xff]   ;;  %v2885_v0 = vld [vmem:[#allocation19 + $0xf0] sm:$0xff]  }
 0x9df   : > { %1428 = vadd.xlane.f32.xlu0 %v3918_v49  ;;  %1714 = vmatpush1.bf16.msra.mxu0 %v2827_v61  ;;  %v2874_v48 = vld [vmem:[#allocation19 + $0x18] sm:$0xff]   ;;  %v2887_v61 = vld [vmem:[#allocation19 + $0xb0] sm:$0xff]  }
 0x9e0   : > { %1715 = vmatprep.subr.bf16.mxu0 %v2835_v5  ;;  %v2875_v50 = vld [vmem:[#allocation19 + $0x98] sm:$0xff]   ;;  %v1498_v5 = vsub.s32 2, %v3844_v55 }
 0x9e2   : > { %v1499_v51 = vrot.slane %v1486_v6, %v1498_v5 }
 0x9e3   : > { %1716 = vmatpush1.bf16.msra.mxu0 %v2833_v7  ;;  %v1494_v7 = vsub.s32 1, %v3844_v55 }
 0x9e4   : > { %1717 = vmatprep.subr.bf16.mxu0 %v2841_v9  ;;  %v1491_v9 = vrot.slane %v1486_v6, %v1490_v4 }
 0x9e7   : > { %1718 = vmatpush1.bf16.msra.mxu0 %v2839_v10  ;;  %v1495_v10 = vrot.slane %v1486_v6, %v1494_v7 }
 0x9e8   : > { %1719 = vmatprep.subr.bf16.mxu0 %v2847_v12 }
 0x9eb   : > { %1720 = vmatpush1.bf16.msra.mxu0 %v2845_v14 }
 0x9ec   : > { %1721 = vmatprep.subr.bf16.mxu0 %v2853_v16 }
 0x9ef   : > { %1722 = vmatpush1.bf16.msra.mxu0 %v2851_v18 }
 0x9f0   : > { %1723 = vmatprep.subr.bf16.mxu0 %v2859_v20 }
 0x9f3   : > { %1724 = vmatpush1.bf16.msra.mxu0 %v2857_v23 }
 0x9f4   : > { %2492 = vmatprep.subr.bf16.mxu0 %v2861_v26 }
 0xa6c   : > { %v1429_v62 = vpop.xlane.xlu0 %1428 }
 0xa6d   : > { %v1430_v63 = vmul.f32 0.0078125, %v1429_v62  ;;  %v2888_v62 = vld [vmem:[#allocation19 + $0x78] sm:$0xff]  }
 0xa6f   : > { %v1431_v1 = vsub.f32 %v3918_v49, %v1430_v63  ;;  %v2889_v63 = vld [vmem:[#allocation19 + $0xf8] sm:$0xff]  }
 0xa71   : > { %v1432_v2 = vmul.f32 %v1431_v1, %v1431_v1 }
 0xa73   : > { %1433 = vadd.xlane.f32.xlu1 %v1432_v2  ;;  %v2891_v2 = vld [vmem:[#allocation19 + $0xb8] sm:$0xff]  }
 0xb00   : > { %v1434_v27 = vpop.xlane.xlu1 %1433 }
 0xb01   : > { %v1435_v28 = vmul.f32 0.0078125, %v1434_v27 }
 0xb03   : > { %v1436_v29 = vadd.f32 1e-05, %v1435_v28 }
 0xb05   : > { %2910 = vrsqrt.f32 %v1436_v29 }
 0xb0f   : > { %v2911_v30 = vpop.eup %2910 }
 0xb10   : > { %v1438_v32 = vmul.f32 %v2911_v30, %v1431_v1  ;;  %v2890_v1 = vld [vmem:[#allocation19 + $0x38] sm:$0xff]  }
 0xb12   : > { %v1445_v34 = vmul.f32 %v2365_v31, %v1438_v32 }
 0xb14   : > { %v1452_v35 = vadd.f32 %v2366_v33, %v1445_v34 }
 0xb16   : > { %v1453_v38 = vpack.c.bf16 %v1452_v35, %v1452_v35  ;;  %v2399_v35 = vld [vmem:[#allocation20] ss:$0 sm:$0xff] }
 0xb18   : > { %1701 = vmatmul.mubr.bf16.vlgmr.msra.gmra.mrb[28].mxu1 %v1453_v38  ;;  %1742 = vmatmul.mubr.bf16.vlgmr.msra.gmra.mrb[16].mxu0 %v1453_v38 }
 0xb19   : > { %2471 = vmatpush3.bf16.msra.mxu1 %v2862_v36  ;;  %2493 = vmatpush3.bf16.msra.mxu0 %v2863_v37 }
 0xb1a   : > { %2472 = vmatprep.subr.bf16.mxu1 %v2864_v39  ;;  %2494 = vmatprep.subr.bf16.mxu0 %v2865_v3 }
 0xb1d   : > { %2473 = vmatpush3.bf16.msra.mxu1 %v2866_v40  ;;  %2495 = vmatpush3.bf16.msra.mxu0 %v2867_v41 }
 0xb1e   : > { %2474 = vmatprep.subr.bf16.mxu1 %v2868_v42  ;;  %2496 = vmatprep.subr.bf16.mxu0 %v2869_v43 }
 0xb21   : > { %2475 = vmatpush3.bf16.msra.mxu1 %v2870_v44  ;;  %2497 = vmatpush3.bf16.msra.mxu0 %v2871_v45 }
 0xb22   : > { %2476 = vmatprep.subr.bf16.mxu1 %v2872_v46  ;;  %2498 = vmatprep.subr.bf16.mxu0 %v2873_v47 }
 0xb25   : > { %2477 = vmatpush3.bf16.msra.mxu1 %v2874_v48  ;;  %2499 = vmatpush3.bf16.msra.mxu0 %v2875_v50 }
 0xb26   : > { %2478 = vmatprep.subr.bf16.mxu1 %v2876_v52  ;;  %2500 = vmatprep.subr.bf16.mxu0 %v2877_v21 }
 0xb29   : > { %2479 = vmatpush3.bf16.msra.mxu1 %v2878_v53  ;;  %2501 = vmatpush3.bf16.msra.mxu0 %v2879_v54 }
 0xb2a   : > { %2480 = vmatprep.subr.bf16.mxu1 %v2880_v56  ;;  %2502 = vmatprep.subr.bf16.mxu0 %v2881_v57 }
 0xb2d   : > { %2481 = vmatpush3.bf16.msra.mxu1 %v2882_v25  ;;  %2503 = vmatpush3.bf16.msra.mxu0 %v2883_v58 }
 0xb2e   : > { %2482 = vmatprep.subr.bf16.mxu1 %v2884_v59  ;;  %2504 = vmatprep.subr.bf16.mxu0 %v2885_v0 }
 0xb31   : > { %2483 = vmatpush3.bf16.msra.mxu1 %v2886_v60  ;;  %2505 = vmatpush3.bf16.msra.mxu0 %v2887_v61 }
 0xb32   : > { %2484 = vmatprep.subr.bf16.mxu1 %v2888_v62  ;;  %2506 = vmatprep.subr.bf16.mxu0 %v2889_v63 }
 0xb35   : > { %2485 = vmatpush3.bf16.msra.mxu1 %v2890_v1  ;;  %2507 = vmatpush3.bf16.msra.mxu0 %v2891_v2 }
 0xbeb   : > { %v1702_v12 = vpop.f32.mrb[28].mxu1  ;;  %v1743_v13 = vpop.f32.mrb[16].mxu0 }
 0xbec   : > { %v1703_v14 = vadd.f32 %v1702_v12, %v1491_v9  ;;  %v1744_v15 = vadd.f32 %v1743_v13, %v1499_v51  ;;  %v1704_v16 = vpop.f32.mrb[29].mxu1  ;;  %v1745_v17 = vpop.f32.mrb[17].mxu0 }
 0xbed   : > { %v1705_v18 = vadd.f32 %v1704_v16, %v1495_v10  ;;  %v1746_v19 = vadd.f32 %v1745_v17, %v1503_v11  ;;  %v1706_v20 = vpop.f32.mrb[30].mxu1  ;;  %v1747_v22 = vpop.f32.mrb[18].mxu0 }
 0xbee   : > { %v1750_v23 = vmax.f32 %v1703_v14, 0.0  ;;  %v1752_v24 = vmax.f32 %v1744_v15, 0.0  ;;  %v1707_v26 = vpop.f32.mrb[31].mxu1  ;;  %v1748_v27 = vpop.f32.mrb[19].mxu0 }
 0xbef   : > { %v1751_v28 = vmax.f32 %v1705_v18, 0.0  ;;  %v1753_v55 = vmax.f32 %v1746_v19, 0.0 }
 0xbf0   : > { %v1754_v31 = vpack.c.bf16 %v1750_v23, %v1750_v23  ;;  %v1756_v32 = vpack.c.bf16 %v1752_v24, %v1752_v24 }
 0xbf1   : > { %v1755_v29 = vpack.c.bf16 %v1751_v28, %v1751_v28  ;;  %v1757_v30 = vpack.c.bf16 %v1753_v55, %v1753_v55 }
 0xbf3   : > { %2053 = vmatprep.mubr.bf16.mxu1 %v1755_v29  ;;  %2093 = vmatprep.mubr.bf16.mxu0 %v1757_v30 }
 0xbf4   : > { %2054 = vmatmul.mubr.bf16.vlgmr.msra.gmra.mrb[32].mxu1 %v1754_v31  ;;  %2094 = vmatmul.mubr.bf16.vlgmr.msra.gmra.mrb[20].mxu0 %v1756_v32 }
 0xcc7   : > { %v2486_v33 = vpop.f32.mrb[32].mxu1  ;;  %v2508_v34 = vpop.f32.mrb[20].mxu0 }
 0xcc8   : > { %v2487_v36 = vpop.f32.mrb[33].mxu1  ;;  %v2509_v37 = vpop.f32.mrb[21].mxu0 }
 0xcc9   : > { %v2488_v38 = vadd.f32 %v2487_v36, %v2486_v33  ;;  %v2510_v39 = vadd.f32 %v2509_v37, %v2508_v34  ;;  %v2489_v3 = vpop.f32.mrb[34].mxu1  ;;  %v2511_v40 = vpop.f32.mrb[22].mxu0 }
 0xcca   : > { %v2490_v41 = vpop.f32.mrb[35].mxu1  ;;  %v2512_v42 = vpop.f32.mrb[23].mxu0 }
 0xccb   : > { %v2056_v43 = vadd.f32 %v2488_v38, %v2399_v35 }
 0xccd   : > { %v2096_v44 = vadd.f32 %v2510_v39, %v2056_v43 }
 0xccf   : > { %v2101_v45 = vadd.f32 %v2096_v44, %v3918_v49 }
 0xcd1   : > { %2102 = vst [vmem:[%s574_s12] sm:$0xff] %v2101_v45 }
 0xcd2   : > { %3263 = shalt.err (!%p3260_p9)
}
 0xcd3   : > { %s3264_s16 = scalar_lea.hbm %s3933_s25, 128  ;;  %s3268_s29 = scalar_lea.hbm %s4031_s26, 256 }
 0xcd4   : > { %p3265_p7 = scmp.ne.s32.totalorder %s3933_s25, %s3264_s16  ;;  %p3269_p13 = scmp.lt.u32.totalorder %s3933_s25, %s4031_s26 }
 0xcd5   : > { %p3270_p1 = scmp.lt.u32.totalorder %s3268_s29, %s3264_s16  ;;  %p3272_p2 = scmp.lt.u32.totalorder %s3264_s16, %s3933_s25 }
 0xcd6   : > { %p3266_p10 = pnand %p3265_p7, %p4032_p0 }
 0xcd7   : > { %p3271_p3 = por %p3270_p1, %p3269_p13 }
 0xcd8   : > { %p3267_p4 = pneg %p3266_p10 }
 0xcd9   : > { %p3273_p6 = por %p3272_p2, %p3271_p3 }
 0xcdb   : > { %p3274_p11 = pnand %p3273_p6, %p3267_p4 }
 0xcdd   : > { %3277 = shalt.err (!%p3274_p11)
}
 0xcde   : > { %2648 = dma.vmem_to_hbm [thread:$0]  (%p4032_p0), %s3935_s18, 128, %s3933_s25, %s2104_s5  }
 0xcdf PF: > { %s2129_s19 = sand.u32 1, %s3328_s21   ;;  %p4033_p12 = scmp.ne.s32.totalorder %s4015_s2, 0 }
 0xce0   : > { %p4034_p8 = scmp.ge.s32.totalorder %s3340_s24, 2  ;;  %s2130_s30 = scalar_lea.sflag [#allocation4], %s2129_s19 }
 0xce2   : > { %p2689_p5 = pnand %p4034_p8, %p4033_p12 }
 0xce4   : > { %3323 = dma.done.wait (!%p2689_p5), %s2130_s30, 128  }
 0xce5   : > { %3325 = vsyncadd (!%p2689_p5), %s2130_s30, 4294967168  ;;  %p31_p9 = scmp.ge.s32.totalorder %s3707_s13, 4   ;;  %s4035_s21 = smov %s3332_s22 }
 0xce6   : > { %s4036_s22 = smov %s3336_s23  ;;  %s4037_s23 = smov %s3719_s20 }
 0xce7   : > { %s4038_s24 = smov %s3707_s13  ;;  %33 = sbr.rel (!%p31_p9) target bundleno = 17 (0x11), region = 157 }
 0xcee   :  { %2135 = vsyncpa [#allocation3], 1 }
 0xcef   :  { %2137 = vsyncpa [#allocation3 + $0x1], 1 }
 0xcf0   :  { %2138 = vsyncpa [#allocation6], 1 }
 0xcf1   :  { %2139 = vsyncpa [#allocation9], 1 }
 0xcf2   :  { %2140 = vsyncpa [#allocation12], 1 }
 0xcf3   :  { %2141 = vsyncpa [#allocation15], 1 }
 0xcf4   :  { %2142 = vsyncpa [#allocation18], 1 }
 0xcf5   :  { %2143 = vsyncpa [#allocation21], 1 }
 0xcf6   :  { %2144 = vsyncpa [#allocation4], 1 }
 0xcf7   :  { %2146 = vsyncpa [#allocation4 + $0x1], 1 }

</bundles_post_ra>
